<compile_context>
chip_gen: v7x
topology: tpu7x:2x2x1
jax: 0.10.0
libtpu: 0.0.40
codegen_flags: <defaults>
</compile_context>

<pallas_src>
import jax
import jax.numpy as jnp
from jax.experimental import pallas as pl
from jax.experimental.pallas import tpu as pltpu


def gcn_kernel(a_ref, x_ref, w_ref, b_ref, dall_ref, drow_ref, out_ref):
    """One row-tile of the fused GCN layer + log-softmax.

    a_ref:    (tm, N)       bf16  raw adjacency + self-loops (0/1/2 values)
    x_ref:    (N, nfeat)    f32   node features (full, VMEM-resident)
    w_ref:    (nfeat, Cpad) f32   zero-padded weight
    b_ref:    (1, Cpad)     f32   bias; padded class columns hold -1e30
    dall_ref: (N, 1)        f32   d^-1/2 for all nodes (column scaling)
    drow_ref: (tm, 1)       f32   d^-1/2 for this row tile (row scaling)
    out_ref:  (tm, Cpad)    f32   log-softmax output
    """
    # Feature transform (tiny, f32): support = d^-1/2[:,None] * (X @ W_pad).
    support = jnp.dot(x_ref[...], w_ref[...], preferred_element_type=jnp.float32)
    support = (dall_ref[...] * support).astype(jnp.bfloat16)

    # Aggregation on the MXU: bf16 operands, f32 accumulation.
    agg = jnp.dot(a_ref[...], support, preferred_element_type=jnp.float32)

    # Row-side normalization + bias.  Padded columns of support are exactly 0,
    # so padded columns of agg become b_pad's -1e30 (pre-masked, finite).
    agg = drow_ref[...] * agg + b_ref[...]

    # Numerically stable log-softmax over classes (f32 throughout).
    m = jnp.max(agg, axis=1, keepdims=True)
    z = agg - m
    lse = jnp.log(jnp.sum(jnp.exp(z), axis=1, keepdims=True))
    out_ref[...] = (z - lse).astype(out_ref.dtype)


def _num_tensorcores():
    """Best-effort: 2 row tiles only on 2-TC chips (v7x-class); else 1."""
    try:
        kind = (getattr(jax.devices()[0], "device_kind", "") or "").lower()
        if "v7" in kind:
            return 2
    except Exception:
        pass
    return 1


def gcn_forward(x, edge_index, weight, bias, tm=None):
    """x: [N, nfeat] f32, edge_index: [2, E] int32, weight: [nfeat, nclass], bias: [nclass]."""
    n, nfeat = x.shape
    nclass = weight.shape[1]
    c_pad = ((nclass + 127) // 128) * 128  # lane-dense class dimension

    # --- glue: build (A + I) in bf16 and d^-1/2 from it (index scatter) ---
    # TODO(synk): for graphs beyond a few thousand nodes, replace the dense
    # adjacency with a scalar-prefetch CSR gather-accumulate formulation.
    src, dst = edge_index[0], edge_index[1]
    a_bf16 = jnp.zeros((n, n), jnp.bfloat16).at[src, dst].set(jnp.bfloat16(1.0))
    a_bf16 = a_bf16 + jnp.eye(n, dtype=jnp.bfloat16)             # self-loops
    deg = jnp.sum(a_bf16, axis=1, dtype=jnp.float32)             # exact: 0/1/2 values
    d_inv_sqrt = jnp.where(deg > 0, 1.0 / jnp.sqrt(deg), 0.0)    # [N]
    d_col = d_inv_sqrt.reshape(n, 1).astype(jnp.float32)         # [N, 1]

    # --- padded parameters; padded bias columns carry the class mask ---
    w_pad = jnp.zeros((nfeat, c_pad), jnp.float32).at[:, :nclass].set(
        weight.astype(jnp.float32))
    b_pad = jnp.full((1, c_pad), -1e30, jnp.float32).at[:, :nclass].set(
        bias.reshape(1, nclass).astype(jnp.float32))
    x_f32 = x.astype(jnp.float32)

    # --- row-tile choice (must divide N; non-full tiles must be sublane multiples) ---
    if tm is None:
        tiles = _num_tensorcores()
        if tiles > 1 and n % tiles == 0 and (n // tiles) % 8 == 0:
            tm = n // tiles
        else:
            tm = n
    if n % tm != 0 or (tm != n and tm % 8 != 0):
        tm = n
    grid = (n // tm,)

    cost = pl.CostEstimate(
        flops=2 * n * n * c_pad + 2 * n * nfeat * c_pad * grid[0] + 4 * n * c_pad,
        transcendentals=n * c_pad + n,
        bytes_accessed=(n * n * 2 + n * nfeat * 4 + nfeat * c_pad * 4
                        + 2 * n * 4 + c_pad * 4 + n * c_pad * 4),
    )

    out_pad = pl.pallas_call(
        gcn_kernel,
        out_shape=jax.ShapeDtypeStruct((n, c_pad), jnp.float32),
        grid=grid,
        in_specs=[
            pl.BlockSpec((tm, n), lambda i: (i, 0)),        # adjacency row tile (bf16)
            pl.BlockSpec((n, nfeat), lambda i: (0, 0)),     # features, VMEM-resident
            pl.BlockSpec((nfeat, c_pad), lambda i: (0, 0)), # padded weight, resident
            pl.BlockSpec((1, c_pad), lambda i: (0, 0)),     # padded/masked bias
            pl.BlockSpec((n, 1), lambda i: (0, 0)),         # d^-1/2, all nodes
            pl.BlockSpec((tm, 1), lambda i: (i, 0)),        # d^-1/2, this row tile
        ],
        out_specs=pl.BlockSpec((tm, c_pad), lambda i: (i, 0)),
        compiler_params=pltpu.CompilerParams(
            dimension_semantics=("parallel",),              # row tiles are independent
            vmem_limit_bytes=32 * 1024 * 1024,
        ),
        cost_estimate=cost,
    )(a_bf16, x_f32, w_pad, b_pad, d_col, d_col)

    return out_pad[:, :nclass]


def gcn_reference(x, edge_index, weight, bias):
    n = x.shape[0]
    src, dst = edge_index[0], edge_index[1]
    a = jnp.zeros((n, n), jnp.float32).at[src, dst].set(1.0)
    a = a + jnp.eye(n, dtype=jnp.float32)
    deg = jnp.sum(a, axis=1)
    d_inv_sqrt = jnp.where(deg > 0, 1.0 / jnp.sqrt(deg), 0.0)
    a_norm = a * d_inv_sqrt[:, None] * d_inv_sqrt[None, :]
    out = a_norm @ (x @ weight) + bias[None, :]
    return jax.nn.log_softmax(out, axis=1)


if __name__ == "__main__":
    key = jax.random.PRNGKey(0)
    num_nodes, nfeat, nclass, num_edges = 256, 16, 8, 1024

    k_x, k_e, k_w, k_b = jax.random.split(key, 4)
    x = jax.random.normal(k_x, (num_nodes, nfeat), dtype=jnp.float32)
    edge_index = jax.random.randint(k_e, (2, num_edges), 0, num_nodes, dtype=jnp.int32)

    # pygcn-style uniform init, stdv = 1/sqrt(nclass)
    stdv = 1.0 / (nclass ** 0.5)
    weight = jax.random.uniform(k_w, (nfeat, nclass), minval=-stdv, maxval=stdv,
                                dtype=jnp.float32)
    bias = jax.random.uniform(k_b, (nclass,), minval=-stdv, maxval=stdv,
                              dtype=jnp.float32)

    out = gcn_forward(x, edge_index, weight, bias)   # grid=(1,) on v5e/v6e, (2,) on v7x
    out = jax.block_until_ready(out)

    ref = gcn_reference(x, edge_index, weight, bias)
    assert out.shape == (num_nodes, nclass)
    # bf16 MXU operands with f32 accumulation -> loose tolerance vs. f32 reference.
    assert jnp.allclose(out, ref, atol=5e-2, rtol=5e-2), float(jnp.max(jnp.abs(out - ref)))

    print("KERNEL_OK")
</pallas_src>

<mosaic_0001>
module attributes {stable_mosaic.version = 11 : i64} {
  func.func @gcn_kernel(%arg0: i32, %arg1: memref<256x256xbf16, #tpu.memory_space<vmem>>, %arg2: memref<256x16xf32, #tpu.memory_space<vmem>>, %arg3: memref<16x128xf32, #tpu.memory_space<vmem>>, %arg4: memref<1x128xf32, #tpu.memory_space<vmem>>, %arg5: memref<256x1xf32, #tpu.memory_space<vmem>>, %arg6: memref<256x1xf32, #tpu.memory_space<vmem>>, %arg7: memref<256x128xf32, #tpu.memory_space<vmem>>) attributes {dimension_semantics = [#tpu.dimension_semantics<parallel>], iteration_bounds = array<i64: 1>, scalar_prefetch = 0 : i64, scratch_operands = 0 : i64, tpu.core_type = #tpu.core_type<tc>, window_params = [{transform_indices = @transform_0, window_bounds = array<i64: 256, 256>}, {pipeline_mode = #tpu.pipeline_mode<synchronous>, transform_indices = @transform_1, window_bounds = array<i64: 256, 16>}, {pipeline_mode = #tpu.pipeline_mode<synchronous>, transform_indices = @transform_2, window_bounds = array<i64: 16, 128>}, {pipeline_mode = #tpu.pipeline_mode<synchronous>, transform_indices = @transform_3, window_bounds = array<i64: 1, 128>}, {pipeline_mode = #tpu.pipeline_mode<synchronous>, transform_indices = @transform_4, window_bounds = array<i64: 256, 1>}, {transform_indices = @transform_5, window_bounds = array<i64: 256, 1>}, {transform_indices = @transform_6, window_bounds = array<i64: 256, 128>}]} {
    %c0 = arith.constant 0 : index
    %c0_0 = arith.constant 0 : index
    %0 = vector.load %arg2[%c0, %c0_0] : memref<256x16xf32, #tpu.memory_space<vmem>>, vector<256x16xf32>
    %c0_1 = arith.constant 0 : index
    %c0_2 = arith.constant 0 : index
    %1 = vector.load %arg3[%c0_1, %c0_2] : memref<16x128xf32, #tpu.memory_space<vmem>>, vector<16x128xf32>
    %cst = arith.constant dense<0.000000e+00> : vector<256x128xf32>
    %2 = tpu.matmul %0, %1, %cst {dimension_numbers = #tpu.dot_dimension_numbers<[1], [0], [0], [1], [0, 0, 1, 1], [], []>} : vector<256x16xf32>, vector<16x128xf32>, vector<256x128xf32> -> vector<256x128xf32>
    %c0_3 = arith.constant 0 : index
    %c0_4 = arith.constant 0 : index
    %3 = vector.load %arg5[%c0_3, %c0_4] : memref<256x1xf32, #tpu.memory_space<vmem>>, vector<256x1xf32>
    %4 = vector.broadcast %3 : vector<256x1xf32> to vector<256x128xf32>
    %5 = arith.mulf %4, %2 : vector<256x128xf32>
    %6 = arith.truncf %5 : vector<256x128xf32> to vector<256x128xbf16>
    %c0_5 = arith.constant 0 : index
    %c0_6 = arith.constant 0 : index
    %7 = vector.load %arg1[%c0_5, %c0_6] : memref<256x256xbf16, #tpu.memory_space<vmem>>, vector<256x256xbf16>
    %cst_7 = arith.constant dense<0.000000e+00> : vector<256x128xf32>
    %8 = tpu.matmul %7, %6, %cst_7 {dimension_numbers = #tpu.dot_dimension_numbers<[1], [0], [0], [1], [0, 0, 1, 1], [], []>} : vector<256x256xbf16>, vector<256x128xbf16>, vector<256x128xf32> -> vector<256x128xf32>
    %c0_8 = arith.constant 0 : index
    %c0_9 = arith.constant 0 : index
    %9 = vector.load %arg6[%c0_8, %c0_9] : memref<256x1xf32, #tpu.memory_space<vmem>>, vector<256x1xf32>
    %10 = vector.broadcast %9 : vector<256x1xf32> to vector<256x128xf32>
    %11 = arith.mulf %10, %8 : vector<256x128xf32>
    %c0_10 = arith.constant 0 : index
    %c0_11 = arith.constant 0 : index
    %12 = vector.load %arg4[%c0_10, %c0_11] : memref<1x128xf32, #tpu.memory_space<vmem>>, vector<1x128xf32>
    %13 = vector.broadcast %12 : vector<1x128xf32> to vector<256x128xf32>
    %14 = arith.addf %11, %13 : vector<256x128xf32>
    %cst_12 = arith.constant dense<0xFF800000> : vector<256xf32>
    %15 = vector.multi_reduction <maximumf>, %14, %cst_12 [1] : vector<256x128xf32> to vector<256xf32>
    %16 = vector.shape_cast %15 : vector<256xf32> to vector<256x1xf32>
    %17 = vector.broadcast %16 : vector<256x1xf32> to vector<256x128xf32>
    %18 = arith.subf %14, %17 : vector<256x128xf32>
    %19 = math.exp %18 : vector<256x128xf32>
    %cst_13 = arith.constant dense<0.000000e+00> : vector<256xf32>
    %20 = vector.multi_reduction <add>, %19, %cst_13 [1] : vector<256x128xf32> to vector<256xf32>
    %21 = vector.shape_cast %20 : vector<256xf32> to vector<256x1xf32>
    %22 = math.log %21 : vector<256x1xf32>
    %23 = vector.broadcast %22 : vector<256x1xf32> to vector<256x128xf32>
    %24 = arith.subf %18, %23 : vector<256x128xf32>
    %c0_14 = arith.constant 0 : index
    %c0_15 = arith.constant 0 : index
    %25 = vector.load %arg7[%c0_14, %c0_15] : memref<256x128xf32, #tpu.memory_space<vmem>>, vector<256x128xf32>
    tpu.vector_store %arg7[%c0_14, %c0_15], %24 {strides = array<i32>} : memref<256x128xf32, #tpu.memory_space<vmem>>, vector<256x128xf32>,
    return
  }
  func.func @transform_0(%arg0: i32) -> (i32, i32) {
    %c0_i32 = arith.constant 0 : i32
    %c0_i32_0 = arith.constant 0 : i32
    return %arg0, %c0_i32 : i32, i32
  }
  func.func @transform_1(%arg0: i32) -> (i32, i32) {
    %c0_i32 = arith.constant 0 : i32
    %c0_i32_0 = arith.constant 0 : i32
    %c0_i32_1 = arith.constant 0 : i32
    return %c0_i32, %c0_i32_0 : i32, i32
  }
  func.func @transform_2(%arg0: i32) -> (i32, i32) {
    %c0_i32 = arith.constant 0 : i32
    %c0_i32_0 = arith.constant 0 : i32
    %c0_i32_1 = arith.constant 0 : i32
    return %c0_i32, %c0_i32_0 : i32, i32
  }
  func.func @transform_3(%arg0: i32) -> (i32, i32) {
    %c0_i32 = arith.constant 0 : i32
    %c0_i32_0 = arith.constant 0 : i32
    %c0_i32_1 = arith.constant 0 : i32
    return %c0_i32, %c0_i32_0 : i32, i32
  }
  func.func @transform_4(%arg0: i32) -> (i32, i32) {
    %c0_i32 = arith.constant 0 : i32
    %c0_i32_0 = arith.constant 0 : i32
    %c0_i32_1 = arith.constant 0 : i32
    return %c0_i32, %c0_i32_0 : i32, i32
  }
  func.func @transform_5(%arg0: i32) -> (i32, i32) {
    %c0_i32 = arith.constant 0 : i32
    %c0_i32_0 = arith.constant 0 : i32
    return %arg0, %c0_i32 : i32, i32
  }
  func.func @transform_6(%arg0: i32) -> (i32, i32) {
    %c0_i32 = arith.constant 0 : i32
    %c0_i32_0 = arith.constant 0 : i32
    return %arg0, %c0_i32 : i32, i32
  }
}

</mosaic_0001>

<bundles_post_ra>
// kernel: tpu_custom_call.1
= control target key start
LH: loop header
LB: loop body
LE: loop exit
PB: predicated region body
PF: predicated region fallthrough
CT: control target
= control target key end

     0   :  { %vm59_vm0 = vcmask 130048   ;;  %v2094_v3 = vmov 0   ;;  %s2946_s0 = inlined_call_operand.vmem [shape: bf16[256,256], index: 0, kind: input, shape index: {}]   ;;  %s2947_s1 = inlined_call_operand.vmem [shape: f32[256,16], index: 1, kind: input, shape index: {}]   ;;  %s2948_s2 = inlined_call_operand.vmem [shape: f32[16,128], index: 2, kind: input, shape index: {}]   ;;  %s2949_s3 = inlined_call_operand.vmem [shape: f32[1,128], index: 3, kind: input, shape index: {}]   ;;  %s2950_s4 = inlined_call_operand.vmem [shape: f32[256,1], index: 4, kind: input, shape index: {}]   ;;  %s2951_s5 = inlined_call_operand.vmem [shape: f32[256,1], index: 5, kind: input, shape index: {}]   ;;  %s2952_s6 = inlined_call_operand.hbm [shape: f32[256,128], index: 6, kind: output, shape index: {}]  }
   0x1   :  { %v397_v0 = vld [vmem:[%s2950_s4 + $0x80] sm:$0xff]  ;;  %1893 = vset.pattern.permute.xlu1 %v2094_v3  ;;  %1892 = vset.pattern.permute.xlu0 %v2094_v3  ;;  %v58_v4 = vld [vmem:[%s2948_s2 + $0x8] sm:$0xff]  ;;  %v27_v10 = vld [vmem:[%s2947_s1 + $0x10] sm:$0xff] }
   0x2   :  { %v381_v1 = vld [vmem:[%s2950_s4] sm:$0xff]  ;;  %495 = vperm.xlu0 %1892, %v397_v0   ;;  %v398_v7 = vld [vmem:[%s2950_s4 + $0x88] sm:$0xff]  ;;  %v399_v11 = vld [vmem:[%s2950_s4 + $0x90] sm:$0xff] }
   0x3   :  { %v57_v2 = vld [vmem:[%s2948_s2] sm:$0xff]  ;;  %415 = vperm.xlu1 %1893, %v381_v1   ;;  %v382_v8 = vld [vmem:[%s2950_s4 + $0x8] sm:$0xff]  ;;  %v400_v12 = vld [vmem:[%s2950_s4 + $0x98] sm:$0xff] }
   0x4   :  { %v1868_v5 = vpack.c.bf16 %v58_v4, %v57_v2  ;;  %v25_v6 = vld [vmem:[%s2947_s1] sm:$0xff]  ;;  %v26_v9 = vld [vmem:[%s2947_s1 + $0x8] sm:$0xff]  ;;  %v28_v13 = vld [vmem:[%s2947_s1 + $0x18] sm:$0xff] }
   0x5   :  { %1820 = vmatprep.mubr.msk.f32.mxu0 %vm59_vm0, %v25_v6  ;;  %v29_v14 = vld [vmem:[%s2947_s1 + $0x20] sm:$0xff]  ;;  %v383_v15 = vld [vmem:[%s2950_s4 + $0x10] sm:$0xff]  ;;  %v384_v16 = vld [vmem:[%s2950_s4 + $0x18] sm:$0xff] }
   0x6   :  { %1869 = vmatprep.subr.bf16.mxu0 %v1868_v5  ;;  %500 = vperm.xlu0 %1892, %v398_v7   ;;  %v30_v17 = vld [vmem:[%s2947_s1 + $0x28] sm:$0xff]  ;;  %v31_v18 = vld [vmem:[%s2947_s1 + $0x30] sm:$0xff]  ;;  %v401_v19 = vld [vmem:[%s2950_s4 + $0xa0] sm:$0xff] }
   0x7   :  { %1871 = vmatpush3.bf16.msra.mxu0 %v1868_v5  ;;  %420 = vperm.xlu1 %1893, %v382_v8   ;;  %v402_v20 = vld [vmem:[%s2950_s4 + $0xa8] sm:$0xff]  ;;  %v32_v21 = vld [vmem:[%s2947_s1 + $0x38] sm:$0xff]  ;;  %v33_v22 = vld [vmem:[%s2947_s1 + $0x40] sm:$0xff] }
   0x8   :  { %v385_v23 = vld [vmem:[%s2950_s4 + $0x20] sm:$0xff]  ;;  %v386_v24 = vld [vmem:[%s2950_s4 + $0x28] sm:$0xff]  ;;  %v35_v26 = vld [vmem:[%s2947_s1 + $0x50] sm:$0xff] }
   0x9   :  { %v34_v25 = vld [vmem:[%s2947_s1 + $0x48] sm:$0xff]  ;;  %v403_v27 = vld [vmem:[%s2950_s4 + $0xb0] sm:$0xff]  ;;  %v404_v28 = vld [vmem:[%s2950_s4 + $0xb8] sm:$0xff] }
   0xa   :  { %1821 = vmatmul.mubr.msk.f32.vlgmr.msra.gmra.mrb[0].mxu0 %vm59_vm0, %v26_v9  ;;  %505 = vperm.xlu0 %1892, %v399_v11   ;;  %v36_v29 = vld [vmem:[%s2947_s1 + $0x58] sm:$0xff]  ;;  %v37_v30 = vld [vmem:[%s2947_s1 + $0x60] sm:$0xff]  ;;  %v387_v31 = vld [vmem:[%s2950_s4 + $0x30] sm:$0xff] }
   0xb   :  { %1823 = vmatprep.mubr.msk.f32.mxu0 %vm59_vm0, %v27_v10  ;;  %510 = vperm.xlu1 %1893, %v400_v12   ;;  %v388_v32 = vld [vmem:[%s2950_s4 + $0x38] sm:$0xff]  ;;  %v38_v33 = vld [vmem:[%s2947_s1 + $0x68] sm:$0xff]  ;;  %v39_v34 = vld [vmem:[%s2947_s1 + $0x70] sm:$0xff] }
   0xc   :  { %v405_v35 = vld [vmem:[%s2950_s4 + $0xc0] sm:$0xff]  ;;  %v406_v36 = vld [vmem:[%s2950_s4 + $0xc8] sm:$0xff]  ;;  %v40_v37 = vld [vmem:[%s2947_s1 + $0x78] sm:$0xff] }
   0xd   :  { %v41_v38 = vld [vmem:[%s2947_s1 + $0x80] sm:$0xff]  ;;  %v390_v40 = vld [vmem:[%s2950_s4 + $0x48] sm:$0xff]  ;;  %v43_v42 = vld [vmem:[%s2947_s1 + $0x90] sm:$0xff] }
   0xe   :  { %1824 = vmatmul.mubr.msk.f32.gmra.mrb[2].mxu0 %vm59_vm0, %v28_v13  ;;  %425 = vperm.xlu0 %1892, %v383_v15   ;;  %v389_v39 = vld [vmem:[%s2950_s4 + $0x40] sm:$0xff]  ;;  %v42_v41 = vld [vmem:[%s2947_s1 + $0x88] sm:$0xff]  ;;  %v407_v43 = vld [vmem:[%s2950_s4 + $0xd0] sm:$0xff] }
   0xf   :  { %1826 = vmatprep.mubr.msk.f32.mxu0 %vm59_vm0, %v29_v14  ;;  %430 = vperm.xlu1 %1893, %v384_v16   ;;  %v408_v44 = vld [vmem:[%s2950_s4 + $0xd8] sm:$0xff]  ;;  %v45_v46 = vld [vmem:[%s2947_s1 + $0xa0] sm:$0xff]  ;;  %v391_v47 = vld [vmem:[%s2950_s4 + $0x50] sm:$0xff] }
  0x10   :  { %v44_v45 = vld [vmem:[%s2947_s1 + $0x98] sm:$0xff] }
  0x11   :  { %v392_v48 = vld [vmem:[%s2950_s4 + $0x58] sm:$0xff] }
  0x12   :  { %1827 = vmatmul.mubr.msk.f32.gmra.mrb[4].mxu0 %vm59_vm0, %v30_v17  ;;  %515 = vperm.xlu0 %1892, %v401_v19  }
  0x13   :  { %1829 = vmatprep.mubr.msk.f32.mxu0 %vm59_vm0, %v31_v18  ;;  %520 = vperm.xlu1 %1893, %v402_v20  }
  0x16   :  { %1830 = vmatmul.mubr.msk.f32.gmra.mrb[6].mxu0 %vm59_vm0, %v32_v21  ;;  %435 = vperm.xlu0 %1892, %v385_v23  }
  0x17   :  { %1832 = vmatprep.mubr.msk.f32.mxu0 %vm59_vm0, %v33_v22  ;;  %440 = vperm.xlu1 %1893, %v386_v24  }
  0x1a   :  { %1833 = vmatmul.mubr.msk.f32.gmra.mrb[8].mxu0 %vm59_vm0, %v34_v25  ;;  %525 = vperm.xlu0 %1892, %v403_v27  }
  0x1b   :  { %1835 = vmatprep.mubr.msk.f32.mxu0 %vm59_vm0, %v35_v26  ;;  %530 = vperm.xlu1 %1893, %v404_v28  }
  0x1e   :  { %1836 = vmatmul.mubr.msk.f32.gmra.mrb[10].mxu0 %vm59_vm0, %v36_v29  ;;  %445 = vperm.xlu0 %1892, %v387_v31  }
  0x1f   :  { %1838 = vmatprep.mubr.msk.f32.mxu0 %vm59_vm0, %v37_v30  ;;  %450 = vperm.xlu1 %1893, %v388_v32  }
  0x22   :  { %1839 = vmatmul.mubr.msk.f32.gmra.mrb[12].mxu0 %vm59_vm0, %v38_v33  ;;  %535 = vperm.xlu0 %1892, %v405_v35  }
  0x23   :  { %1841 = vmatprep.mubr.msk.f32.mxu0 %vm59_vm0, %v39_v34  ;;  %540 = vperm.xlu1 %1893, %v406_v36  }
  0x26   :  { %1842 = vmatmul.mubr.msk.f32.gmra.mrb[14].mxu0 %vm59_vm0, %v40_v37  ;;  %455 = vperm.xlu0 %1892, %v389_v39  }
  0x27   :  { %1844 = vmatprep.mubr.msk.f32.mxu0 %vm59_vm0, %v41_v38  ;;  %460 = vperm.xlu1 %1893, %v390_v40  }
  0x2a   :  { %1845 = vmatmul.mubr.msk.f32.gmra.mrb[16].mxu0 %vm59_vm0, %v42_v41  ;;  %545 = vperm.xlu0 %1892, %v407_v43  }
  0x2b   :  { %1847 = vmatprep.mubr.msk.f32.mxu0 %vm59_vm0, %v43_v42  ;;  %550 = vperm.xlu1 %1893, %v408_v44  }
  0x2c   :  { %11 = vsyncpa [#allocation3], 0  ;;  %v46_v49 = vld [vmem:[%s2947_s1 + $0xa8] sm:$0xff]  ;;  %v47_v50 = vld [vmem:[%s2947_s1 + $0xb0] sm:$0xff] }
  0x2d   :  { %v409_v51 = vld [vmem:[%s2950_s4 + $0xe0] sm:$0xff]  ;;  %v410_v52 = vld [vmem:[%s2950_s4 + $0xe8] sm:$0xff]  ;;  %v48_v53 = vld [vmem:[%s2947_s1 + $0xb8] sm:$0xff] }
  0x2e   :  { %1848 = vmatmul.mubr.msk.f32.gmra.mrb[18].mxu0 %vm59_vm0, %v44_v45  ;;  %465 = vperm.xlu0 %1892, %v391_v47   ;;  %v49_v54 = vld [vmem:[%s2947_s1 + $0xc0] sm:$0xff]  ;;  %v394_v56 = vld [vmem:[%s2950_s4 + $0x68] sm:$0xff]  ;;  %v51_v58 = vld [vmem:[%s2947_s1 + $0xd0] sm:$0xff] }
  0x2f   :  { %1850 = vmatprep.mubr.msk.f32.mxu0 %vm59_vm0, %v45_v46  ;;  %470 = vperm.xlu1 %1893, %v392_v48   ;;  %v393_v55 = vld [vmem:[%s2950_s4 + $0x60] sm:$0xff]  ;;  %v50_v57 = vld [vmem:[%s2947_s1 + $0xc8] sm:$0xff]  ;;  %v411_v59 = vld [vmem:[%s2950_s4 + $0xf0] sm:$0xff] }
  0x30   :  { %v412_v60 = vld [vmem:[%s2950_s4 + $0xf8] sm:$0xff]  ;;  %v53_v62 = vld [vmem:[%s2947_s1 + $0xe0] sm:$0xff]  ;;  %v395_v63 = vld [vmem:[%s2950_s4 + $0x70] sm:$0xff] }
  0x31   :  { %v52_v61 = vld [vmem:[%s2947_s1 + $0xd8] sm:$0xff]  ;;  %v54_v1 = vld [vmem:[%s2947_s1 + $0xe8] sm:$0xff]  ;;  %v55_v2 = vld [vmem:[%s2947_s1 + $0xf0] sm:$0xff] }
  0x32   :  { %1851 = vmatmul.mubr.msk.f32.gmra.mrb[20].mxu0 %vm59_vm0, %v46_v49  ;;  %555 = vperm.xlu0 %1892, %v409_v51   ;;  %v396_v0 = vld [vmem:[%s2950_s4 + $0x78] sm:$0xff]  ;;  %v974_v3 = vld [vmem:[%s2951_s5] sm:$0xff]  ;;  %v975_v4 = vld [vmem:[%s2951_s5 + $0x8] sm:$0xff] }
  0x33   :  { %1853 = vmatprep.mubr.msk.f32.mxu0 %vm59_vm0, %v47_v50  ;;  %560 = vperm.xlu1 %1893, %v410_v52   ;;  %v56_v5 = vld [vmem:[%s2947_s1 + $0xf8] sm:$0xff]  ;;  %v976_v6 = vld [vmem:[%s2951_s5 + $0x10] sm:$0xff]  ;;  %v978_v8 = vld [vmem:[%s2951_s5 + $0x20] sm:$0xff] }
  0x34   :  { %v977_v7 = vld [vmem:[%s2951_s5 + $0x18] sm:$0xff]  ;;  %v979_v9 = vld [vmem:[%s2951_s5 + $0x28] sm:$0xff]  ;;  %v980_v10 = vld [vmem:[%s2951_s5 + $0x30] sm:$0xff] }
  0x35   :  { %v981_v11 = vld [vmem:[%s2951_s5 + $0x38] sm:$0xff]  ;;  %v982_v12 = vld [vmem:[%s2951_s5 + $0x40] sm:$0xff]  ;;  %v983_v13 = vld [vmem:[%s2951_s5 + $0x48] sm:$0xff] }
  0x36   :  { %1854 = vmatmul.mubr.msk.f32.gmra.mrb[22].mxu0 %vm59_vm0, %v48_v53  ;;  %475 = vperm.xlu0 %1892, %v393_v55   ;;  %v984_v14 = vld [vmem:[%s2951_s5 + $0x50] sm:$0xff]  ;;  %v985_v15 = vld [vmem:[%s2951_s5 + $0x58] sm:$0xff]  ;;  %v986_v16 = vld [vmem:[%s2951_s5 + $0x60] sm:$0xff] }
  0x37   :  { %1856 = vmatprep.mubr.msk.f32.mxu0 %vm59_vm0, %v49_v54  ;;  %480 = vperm.xlu1 %1893, %v394_v56   ;;  %v987_v17 = vld [vmem:[%s2951_s5 + $0x68] sm:$0xff]  ;;  %v988_v18 = vld [vmem:[%s2951_s5 + $0x70] sm:$0xff]  ;;  %v989_v19 = vld [vmem:[%s2951_s5 + $0x78] sm:$0xff] }
  0x38   :  { %v990_v20 = vld [vmem:[%s2951_s5 + $0x80] sm:$0xff]  ;;  %v991_v21 = vld [vmem:[%s2951_s5 + $0x88] sm:$0xff]  ;;  %v992_v22 = vld [vmem:[%s2951_s5 + $0x90] sm:$0xff] }
  0x39   :  { %v993_v23 = vld [vmem:[%s2951_s5 + $0x98] sm:$0xff]  ;;  %v994_v24 = vld [vmem:[%s2951_s5 + $0xa0] sm:$0xff]  ;;  %v995_v25 = vld [vmem:[%s2951_s5 + $0xa8] sm:$0xff] }
  0x3a   :  { %1857 = vmatmul.mubr.msk.f32.gmra.mrb[24].mxu0 %vm59_vm0, %v50_v57  ;;  %565 = vperm.xlu0 %1892, %v411_v59   ;;  %v996_v26 = vld [vmem:[%s2951_s5 + $0xb0] sm:$0xff]  ;;  %v997_v27 = vld [vmem:[%s2951_s5 + $0xb8] sm:$0xff]  ;;  %v998_v28 = vld [vmem:[%s2951_s5 + $0xc0] sm:$0xff] }
  0x3b   :  { %1859 = vmatprep.mubr.msk.f32.mxu0 %vm59_vm0, %v51_v58  ;;  %570 = vperm.xlu1 %1893, %v412_v60   ;;  %v999_v29 = vld [vmem:[%s2951_s5 + $0xc8] sm:$0xff]  ;;  %v1000_v30 = vld [vmem:[%s2951_s5 + $0xd0] sm:$0xff]  ;;  %v1001_v31 = vld [vmem:[%s2951_s5 + $0xd8] sm:$0xff] }
  0x3c   :  { %v1002_v32 = vld [vmem:[%s2951_s5 + $0xe0] sm:$0xff]  ;;  %v1003_v33 = vld [vmem:[%s2951_s5 + $0xe8] sm:$0xff]  ;;  %v1004_v34 = vld [vmem:[%s2951_s5 + $0xf0] sm:$0xff] }
  0x3d   :  { %v1005_v35 = vld [vmem:[%s2951_s5 + $0xf8] sm:$0xff]  ;;  %v1896_v38 = vld [vmem:[%s2946_s0 + $0x4] ss:$8 sps:$4 sm:$0xff]  }
  0x3e   :  { %1860 = vmatmul.mubr.msk.f32.gmra.mrb[26].mxu0 %vm59_vm0, %v52_v61  ;;  %485 = vperm.xlu0 %1892, %v395_v63   ;;  %v1899_v39 = vld [vmem:[%s2946_s0 + $0x54] ss:$8 sps:$4 sm:$0xff]  }
  0x3f   :  { %1862 = vmatprep.mubr.msk.f32.mxu0 %vm59_vm0, %v53_v62  ;;  %490 = vperm.xlu1 %1893, %v396_v0  }
  0x40   :  { %885 = vmatprep.mubr.bf16.mxu1 %v1899_v39 }
  0x42   :  { %1863 = vmatmul.mubr.msk.f32.gmra.mrb[28].mxu0 %vm59_vm0, %v54_v1  ;;  %1008 = vperm.xlu0 %1892, %v974_v3  }
  0x43   :  { %1865 = vmatprep.mubr.msk.f32.mxu0 %vm59_vm0, %v55_v2  ;;  %1013 = vperm.xlu1 %1893, %v975_v4  }
  0x46   :  { %1866 = vmatmul.mubr.msk.f32.gmra.mrb[30].mxu0 %vm59_vm0, %v56_v5  ;;  %1018 = vperm.xlu0 %1892, %v976_v6  }
  0x47   :  { %1023 = vperm.xlu1 %1893, %v977_v7   ;;  %845 = vmatprep.mubr.bf16.mxu0 %v1896_v38 }
  0x4a   :  { %1028 = vperm.xlu0 %1892, %v978_v8  }
  0x4b   :  { %1033 = vperm.xlu1 %1893, %v979_v9  }
  0x4e   :  { %1038 = vperm.xlu0 %1892, %v980_v10  }
  0x4f   :  { %1043 = vperm.xlu1 %1893, %v981_v11  }
  0x52   :  { %1048 = vperm.xlu0 %1892, %v982_v12  }
  0x53   :  { %1053 = vperm.xlu1 %1893, %v983_v13  }
  0x56   :  { %1058 = vperm.xlu0 %1892, %v984_v14  }
  0x57   :  { %1063 = vperm.xlu1 %1893, %v985_v15  }
  0x5a   :  { %1068 = vperm.xlu0 %1892, %v986_v16  }
  0x5b   :  { %1073 = vperm.xlu1 %1893, %v987_v17  }
  0x5e   :  { %1078 = vperm.xlu0 %1892, %v988_v18  }
  0x5f   :  { %1083 = vperm.xlu1 %1893, %v989_v19  }
  0x62   :  { %1088 = vperm.xlu0 %1892, %v990_v20  }
  0x63   :  { %1093 = vperm.xlu1 %1893, %v991_v21  }
  0x66   :  { %1098 = vperm.xlu0 %1892, %v992_v22  }
  0x67   :  { %1103 = vperm.xlu1 %1893, %v993_v23  }
  0x6a   :  { %1108 = vperm.xlu0 %1892, %v994_v24  }
  0x6b   :  { %1113 = vperm.xlu1 %1893, %v995_v25  }
  0x6e   :  { %1118 = vperm.xlu0 %1892, %v996_v26  }
  0x6f   :  { %1123 = vperm.xlu1 %1893, %v997_v27  }
  0x72   :  { %1128 = vperm.xlu0 %1892, %v998_v28  }
  0x73   :  { %1133 = vperm.xlu1 %1893, %v999_v29  }
  0x76   :  { %1138 = vperm.xlu0 %1892, %v1000_v30  }
  0x77   :  { %1143 = vperm.xlu1 %1893, %v1001_v31  }
  0x7a   :  { %1148 = vperm.xlu0 %1892, %v1002_v32  }
  0x7b   :  { %1153 = vperm.xlu1 %1893, %v1003_v33  }
  0x7e   :  { %1158 = vperm.xlu0 %1892, %v1004_v34  }
  0x7f   :  { %1163 = vperm.xlu1 %1893, %v1005_v35  }
  0x81   :  { %v2459_v37 = vpop.permute.xlu0 %495 }
  0x82   :  { %v416_v36 = vpop.permute.xlu1 %415 }
  0x85   :  { %v2467_v41 = vpop.permute.xlu0 %500 }
  0x86   :  { %v421_v40 = vpop.permute.xlu1 %420 }
  0x89   :  { %v2471_v43 = vpop.permute.xlu0 %505 }
  0x8a   :  { %v2469_v42 = vpop.permute.xlu1 %510 }
  0x8d   :  { %v426_v45 = vpop.permute.xlu0 %425 }
  0x8e   :  { %v431_v44 = vpop.permute.xlu1 %430 }
  0x91   :  { %v2475_v47 = vpop.permute.xlu0 %515 }
  0x92   :  { %v2473_v46 = vpop.permute.xlu1 %520 }
  0x95   :  { %v436_v49 = vpop.permute.xlu0 %435 }
  0x96   :  { %v441_v48 = vpop.permute.xlu1 %440 }
  0x99   :  { %v2479_v51 = vpop.permute.xlu0 %525 }
  0x9a   :  { %v2477_v50 = vpop.permute.xlu1 %530 }
  0x9d   :  { %v446_v53 = vpop.permute.xlu0 %445 }
  0x9e   :  { %v451_v52 = vpop.permute.xlu1 %450 }
  0xa1   :  { %v2483_v55 = vpop.permute.xlu0 %535 }
  0xa2   :  { %v2481_v54 = vpop.permute.xlu1 %540 }
  0xa5   :  { %v456_v57 = vpop.permute.xlu0 %455 }
  0xa6   :  { %v461_v56 = vpop.permute.xlu1 %460 }
  0xa9   :  { %v2487_v59 = vpop.permute.xlu0 %545 }
  0xaa   :  { %v2485_v58 = vpop.permute.xlu1 %550 }
  0xad   :  { %v466_v3 = vpop.permute.xlu0 %465 }
  0xae   :  { %v471_v0 = vpop.permute.xlu1 %470 }
  0xb1   :  { %v2491_v13 = vpop.permute.xlu0 %555 }
  0xb2   :  { %v2489_v11 = vpop.permute.xlu1 %560 }
  0xb5   :  { %v476_v22 = vpop.permute.xlu0 %475 }
  0xb6   :  { %v481_v19 = vpop.permute.xlu1 %480 }
  0xb9   :  { %v2499_v32 = vpop.permute.xlu0 %565 }
  0xba   :  { %v2497_v30 = vpop.permute.xlu1 %570 }
  0xbe   :  { %v491_v39 = vpop.permute.xlu1 %490 }
  0xdd   :  { %v1822_v60 = vpop.f32.mrb[0].mxu0 }
  0xde   :  { %v574_v61 = vmul.f32 %v1822_v60, %v421_v40  ;;  %v222_v62 = vpop.f32.mrb[1].mxu0 }
  0xdf   :  { %v573_v63 = vmul.f32 %v416_v36, %v222_v62 }
  0xe1   :  { %v605_v1 = vpack.c.bf16 %v574_v61, %v573_v63  ;;  %v1825_v2 = vpop.f32.mrb[2].mxu0 }
  0xe2   :  { %v576_v4 = vmul.f32 %v1825_v2, %v431_v44  ;;  %v232_v5 = vpop.f32.mrb[3].mxu0 }
  0xe3   :  { %v575_v6 = vmul.f32 %v426_v45, %v232_v5  ;;  %v486_v45 = vpop.permute.xlu0 %485 }
  0xe5   :  { %v606_v7 = vpack.c.bf16 %v576_v4, %v575_v6  ;;  %v1828_v8 = vpop.f32.mrb[4].mxu0 }
  0xe6   :  { %v578_v9 = vmul.f32 %v1828_v8, %v441_v48  ;;  %v242_v10 = vpop.f32.mrb[5].mxu0 }
  0xe7   :  { %v577_v12 = vmul.f32 %v436_v49, %v242_v10 }
  0xe9   :  { %v607_v14 = vpack.c.bf16 %v578_v9, %v577_v12  ;;  %v1831_v15 = vpop.f32.mrb[6].mxu0 }
  0xea   :  { %v580_v16 = vmul.f32 %v1831_v15, %v451_v52  ;;  %v252_v17 = vpop.f32.mrb[7].mxu0 }
  0xeb   :  { %v579_v18 = vmul.f32 %v446_v53, %v252_v17 }
  0xed   :  { %v2493_v20 = vpack.c.bf16 %v580_v16, %v579_v18  ;;  %v1834_v21 = vpop.f32.mrb[8].mxu0 }
  0xee   :  { %v582_v23 = vmul.f32 %v1834_v21, %v461_v56  ;;  %v262_v24 = vpop.f32.mrb[9].mxu0 }
  0xef   :  { %v581_v25 = vmul.f32 %v456_v57, %v262_v24  ;;  %v1900_v24 = vld [vmem:[%s2946_s0 + $0x14] ss:$8 sps:$4 sm:$0xff]  }
  0xf1   :  { %v2495_v26 = vpack.c.bf16 %v582_v23, %v581_v25  ;;  %v1837_v27 = vpop.f32.mrb[10].mxu0  ;;  %v1897_v23 = vld [vmem:[%s2946_s0 + $0x50] ss:$8 sps:$4 sm:$0xff]   ;;  %v1902_v25 = vld [vmem:[%s2946_s0 + $0x64] ss:$8 sps:$4 sm:$0xff]  }
  0xf2   :  { %v584_v28 = vmul.f32 %v1837_v27, %v471_v0  ;;  %v272_v29 = vpop.f32.mrb[11].mxu0  ;;  %v1905_v27 = vld [vmem:[%s2946_s0 + $0x60] ss:$8 sps:$4 sm:$0xff]  }
  0xf3   :  { %v583_v31 = vmul.f32 %v466_v3, %v272_v29  ;;  %v1908_v29 = vld [vmem:[%s2946_s0 + $0x74] ss:$8 sps:$4 sm:$0xff]  }
  0xf5   :  { %v2501_v33 = vpack.c.bf16 %v584_v28, %v583_v31  ;;  %v1840_v34 = vpop.f32.mrb[12].mxu0  ;;  %v1906_v28 = vld [vmem:[%s2946_s0 + $0x24] ss:$8 sps:$4 sm:$0xff]   ;;  %v1911_v31 = vld [vmem:[%s2946_s0 + $0x70] ss:$8 sps:$4 sm:$0xff]  }
  0xf6   :  { %v586_v35 = vmul.f32 %v1840_v34, %v481_v19  ;;  %v282_v36 = vpop.f32.mrb[13].mxu0  ;;  %v1916_v34 = vld [vmem:[%s2946_s0 + $0x30] ss:$8 sps:$4 sm:$0xff]  }
  0xf7   :  { %v585_v38 = vmul.f32 %v476_v22, %v282_v36  ;;  %v1918_v36 = vld [vmem:[%s2946_s0 + $0x44] ss:$8 sps:$4 sm:$0xff]  }
  0xf9   :  { %v2503_v40 = vpack.c.bf16 %v586_v35, %v585_v38  ;;  %v1843_v44 = vpop.f32.mrb[14].mxu0  ;;  %v1917_v35 = vld [vmem:[%s2946_s0 + $0x80] ss:$8 sps:$4 sm:$0xff]   ;;  %v1920_v38 = vld [vmem:[%s2946_s0 + $0x94] ss:$8 sps:$4 sm:$0xff]  }
  0xfa   :  { %v588_v48 = vmul.f32 %v1843_v44, %v491_v39  ;;  %v292_v49 = vpop.f32.mrb[15].mxu0  ;;  %v1922_v39 = vld [vmem:[%s2946_s0 + $0x40] ss:$8 sps:$4 sm:$0xff]   ;;  %v1924_v44 = vld [vmem:[%s2946_s0 + $0xa4] ss:$8 sps:$4 sm:$0xff]  }
  0xfb   :  { %v587_v52 = vmul.f32 %v486_v45, %v292_v49  ;;  %v1926_v45 = vld [vmem:[%s2946_s0 + $0xa0] ss:$8 sps:$4 sm:$0xff]   ;;  %v1929_v49 = vld [vmem:[%s2946_s0 + $0xb0] ss:$8 sps:$4 sm:$0xff]  }
  0xfd   :  { %v2505_v53 = vpack.c.bf16 %v588_v48, %v587_v52  ;;  %v1846_v56 = vpop.f32.mrb[16].mxu0  ;;  %v1927_v48 = vld [vmem:[%s2946_s0 + $0xb4] ss:$8 sps:$4 sm:$0xff]   ;;  %v1930_v52 = vld [vmem:[%s2946_s0 + $0xc4] ss:$8 sps:$4 sm:$0xff]  }
  0xfe   :  { %v590_v57 = vmul.f32 %v1846_v56, %v2467_v41  ;;  %v302_v60 = vpop.f32.mrb[17].mxu0  ;;  %v1933_v56 = vld [vmem:[%s2946_s0 + $0xd4] ss:$8 sps:$4 sm:$0xff]  }
  0xff   :  { %v589_v61 = vmul.f32 %v2459_v37, %v302_v60  ;;  %v1936_v60 = vld [vmem:[%s2946_s0 + $0xe4] ss:$8 sps:$4 sm:$0xff]  }
 0x101   :  { %v613_v62 = vpack.c.bf16 %v590_v57, %v589_v61  ;;  %v1849_v63 = vpop.f32.mrb[18].mxu0  ;;  %v1935_v57 = vld [vmem:[%s2946_s0 + $0xd0] ss:$8 sps:$4 sm:$0xff]   ;;  %v1938_v61 = vld [vmem:[%s2946_s0 + $0xe0] ss:$8 sps:$4 sm:$0xff]  }
 0x102   :  { %v592_v0 = vmul.f32 %v1849_v63, %v2469_v42  ;;  %v312_v2 = vpop.f32.mrb[19].mxu0  ;;  %v1941_v63 = vld [vmem:[%s2946_s0 + $0xf0] ss:$8 sps:$4 sm:$0xff]  }
 0x103   :  { %v591_v3 = vmul.f32 %v2471_v43, %v312_v2  ;;  %1704 = vmatprep.subr.bf16.mxu0 %v613_v62  ;;  %1872 = vmatprep.subr.bf16.mxu1 %v613_v62  ;;  %v1939_v62 = vld [vmem:[%s2946_s0 + $0xf4] ss:$8 sps:$4 sm:$0xff]   ;;  %v1014_v2 = vpop.permute.xlu1 %1013 }
 0x104   :  { %1705 = vmatpush3.bf16.msra.mxu0 %v605_v1  ;;  %1880 = vmatpush3.bf16.msra.mxu1 %v605_v1 }
 0x105   :  { %v614_v4 = vpack.c.bf16 %v592_v0, %v591_v3  ;;  %v1852_v5 = vpop.f32.mrb[20].mxu0  ;;  %v1009_v0 = vpop.permute.xlu0 %1008 }
 0x106   :  { %v594_v6 = vmul.f32 %v1852_v5, %v2473_v46  ;;  %v322_v8 = vpop.f32.mrb[21].mxu0 }
 0x107   :  { %v593_v41 = vmul.f32 %v2475_v47, %v322_v8  ;;  %1706 = vmatprep.subr.bf16.mxu0 %v614_v4  ;;  %1873 = vmatprep.subr.bf16.mxu1 %v614_v4  ;;  %v1024_v4 = vpop.permute.xlu1 %1023 }
 0x108   :  { %1707 = vmatpush3.bf16.msra.mxu0 %v606_v7  ;;  %1881 = vmatpush3.bf16.msra.mxu1 %v606_v7 }
 0x109   :  { %v615_v37 = vpack.c.bf16 %v594_v6, %v593_v41  ;;  %v1855_v42 = vpop.f32.mrb[22].mxu0  ;;  %v1019_v3 = vpop.permute.xlu0 %1018 }
 0x10a   :  { %v596_v9 = vmul.f32 %v1855_v42, %v2477_v50  ;;  %v332_v43 = vpop.f32.mrb[23].mxu0 }
 0x10b   :  { %v595_v10 = vmul.f32 %v2479_v51, %v332_v43  ;;  %1708 = vmatprep.subr.bf16.mxu0 %v615_v37  ;;  %1874 = vmatprep.subr.bf16.mxu1 %v615_v37  ;;  %v2625_v6 = vpop.permute.xlu1 %1033 }
 0x10c   :  { %1709 = vmatpush3.bf16.msra.mxu0 %v607_v14  ;;  %1882 = vmatpush3.bf16.msra.mxu1 %v607_v14 }
 0x10d   :  { %v616_v1 = vpack.c.bf16 %v596_v9, %v595_v10  ;;  %v1858_v46 = vpop.f32.mrb[24].mxu0  ;;  %v2623_v5 = vpop.permute.xlu0 %1028 }
 0x10e   :  { %v598_v12 = vmul.f32 %v1858_v46, %v2481_v54  ;;  %v342_v47 = vpop.f32.mrb[25].mxu0 }
 0x10f   :  { %v597_v15 = vmul.f32 %v2483_v55, %v342_v47  ;;  %1710 = vmatprep.subr.bf16.mxu0 %v616_v1  ;;  %1875 = vmatprep.subr.bf16.mxu1 %v616_v1  ;;  %v2629_v41 = vpop.permute.xlu1 %1043 }
 0x110   :  { %1711 = vmatpush3.bf16.msra.mxu0 %v2493_v20  ;;  %1883 = vmatpush3.bf16.msra.mxu1 %v2493_v20 }
 0x111   :  { %v617_v50 = vpack.c.bf16 %v598_v12, %v597_v15  ;;  %v1861_v7 = vpop.f32.mrb[26].mxu0  ;;  %v2627_v8 = vpop.permute.xlu0 %1038 }
 0x112   :  { %v600_v51 = vmul.f32 %v1861_v7, %v2485_v58  ;;  %v352_v16 = vpop.f32.mrb[27].mxu0 }
 0x113   :  { %v599_v14 = vmul.f32 %v2487_v59, %v352_v16  ;;  %1712 = vmatprep.subr.bf16.mxu0 %v617_v50  ;;  %1876 = vmatprep.subr.bf16.mxu1 %v617_v50  ;;  %v2633_v42 = vpop.permute.xlu1 %1053  ;;  %v2638_v16 = vld [vmem:[%s2949_s3] ss:$0 sm:$0xff]  ;;  %s2095_s3 = smov [#allocation2]  }
 0x114   :  { %1713 = vmatpush3.bf16.msra.mxu0 %v2495_v26  ;;  %1884 = vmatpush3.bf16.msra.mxu1 %v2495_v26  ;;  %v1904_v26 = vld [vmem:[%s2946_s0 + $0x10] ss:$8 sps:$4 sm:$0xff]   ;;  %s1594_s19 = sshll.u32 %s2095_s3, 4  ;;  %s1595_s19 = int_to_ptr.vmem [resolvable:$true] %s1594_s19 }
 0x115   :  { %v618_v54 = vpack.c.bf16 %v600_v51, %v599_v14  ;;  %v1864_v55 = vpop.f32.mrb[28].mxu0  ;;  %v2631_v37 = vpop.permute.xlu0 %1048  ;;  %s2070_s20 = scalar_lea.vmem %s1595_s19, 4096  ;;  %p2075_p1 = scmp.lt.s32.totalorder %s1595_s19, %s1595_s19 }
 0x116   :  { %v602_v17 = vmul.f32 %v1864_v55, %v2489_v11  ;;  %v362_v18 = vpop.f32.mrb[29].mxu0  ;;  %p2071_p0 = scmp.ne.s32.totalorder %s1595_s19, %s2070_s20  ;;  %p2076_p2 = scmp.lt.s32.totalorder %s2070_s20, %s2070_s20 }
 0x117   :  { %v601_v19 = vmul.f32 %v2491_v13, %v362_v18  ;;  %1714 = vmatprep.subr.bf16.mxu0 %v618_v54  ;;  %1877 = vmatprep.subr.bf16.mxu1 %v618_v54  ;;  %v1894_v13 = vld [vmem:[%s2946_s0] ss:$8 sps:$4 sm:$0xff]   ;;  %v1064_v18 = vpop.permute.xlu1 %1063 }
 0x118   :  { %1715 = vmatpush3.bf16.msra.mxu0 %v2501_v33  ;;  %1885 = vmatpush3.bf16.msra.mxu1 %v2501_v33  ;;  %v1914_v33 = vld [vmem:[%s2946_s0 + $0x84] ss:$8 sps:$4 sm:$0xff]   ;;  %p2077_p3 = por %p2076_p2, %p2075_p1 }
 0x119   :  { %v619_v58 = vpack.c.bf16 %v602_v17, %v601_v19  ;;  %v1867_v59 = vpop.f32.mrb[30].mxu0  ;;  %v1059_v9 = vpop.permute.xlu0 %1058 }
 0x11a   :  { %v604_v20 = vmul.f32 %v1867_v59, %v2497_v30  ;;  %v372_v21 = vpop.f32.mrb[31].mxu0  ;;  %v1910_v30 = vld [vmem:[%s2946_s0 + $0x20] ss:$8 sps:$4 sm:$0xff]   ;;  %p2078_p4 = pnand %p2077_p3, %p2071_p0 }
 0x11b   :  { %v603_v22 = vmul.f32 %v2499_v32, %v372_v21  ;;  %1716 = vmatprep.subr.bf16.mxu0 %v619_v58  ;;  %1878 = vmatprep.subr.bf16.mxu1 %v619_v58  ;;  %v1912_v32 = vld [vmem:[%s2946_s0 + $0x34] ss:$8 sps:$4 sm:$0xff]  }
 0x11c   :  { %1717 = vmatpush3.bf16.msra.mxu0 %v2503_v40  ;;  %1886 = vmatpush3.bf16.msra.mxu1 %v2503_v40  ;;  %v1923_v40 = vld [vmem:[%s2946_s0 + $0x90] ss:$8 sps:$4 sm:$0xff]  }
 0x11d   :  { %v620_v11 = vpack.c.bf16 %v604_v20, %v603_v22  ;;  %v1069_v20 = vpop.permute.xlu0 %1068 }
 0x11f   :  { %1718 = vmatprep.subr.bf16.mxu0 %v620_v11  ;;  %1879 = vmatprep.subr.bf16.mxu1 %v620_v11 }
 0x120   :  { %1719 = vmatpush3.bf16.msra.mxu0 %v2505_v53  ;;  %1887 = vmatpush3.bf16.msra.mxu1 %v2505_v53  ;;  %v1932_v53 = vld [vmem:[%s2946_s0 + $0xc0] ss:$8 sps:$4 sm:$0xff]  }
 0x123   :  { %846 = vmatmul.mubr.bf16.vlgmr.msra.gmra.mrb[32].mxu0 %v1894_v13  ;;  %886 = vmatmul.mubr.bf16.vlgmr.msra.gmra.mrb[0].mxu1 %v1897_v23 }
 0x124   :  { %853 = vmatprep.mubr.bf16.mxu0 %v1900_v24  ;;  %893 = vmatprep.mubr.bf16.mxu1 %v1902_v25 }
 0x12b   :  { %854 = vmatmul.mubr.bf16.gmra.mrb[36].mxu0 %v1904_v26  ;;  %894 = vmatmul.mubr.bf16.gmra.mrb[4].mxu1 %v1905_v27 }
 0x12c   :  { %861 = vmatprep.mubr.bf16.mxu0 %v1906_v28  ;;  %901 = vmatprep.mubr.bf16.mxu1 %v1908_v29 }
 0x133   :  { %862 = vmatmul.mubr.bf16.gmra.mrb[40].mxu0 %v1910_v30  ;;  %902 = vmatmul.mubr.bf16.gmra.mrb[8].mxu1 %v1911_v31 }
 0x134   :  { %869 = vmatprep.mubr.bf16.mxu0 %v1912_v32  ;;  %909 = vmatprep.mubr.bf16.mxu1 %v1914_v33 }
 0x13b   :  { %870 = vmatmul.mubr.bf16.gmra.mrb[44].mxu0 %v1916_v34  ;;  %910 = vmatmul.mubr.bf16.gmra.mrb[12].mxu1 %v1917_v35 }
 0x13c   :  { %877 = vmatprep.mubr.bf16.mxu0 %v1918_v36  ;;  %917 = vmatprep.mubr.bf16.mxu1 %v1920_v38 }
 0x143   :  { %878 = vmatmul.mubr.bf16.gmra.mrb[48].mxu0 %v1922_v39  ;;  %918 = vmatmul.mubr.bf16.gmra.mrb[16].mxu1 %v1923_v40  ;;  %v1074_v39 = vpop.permute.xlu1 %1073 }
 0x144   :  { %925 = vmatprep.mubr.bf16.mxu1 %v1924_v44 }
 0x14b   :  { %926 = vmatmul.mubr.bf16.gmra.mrb[20].mxu1 %v1926_v45 }
 0x14c   :  { %933 = vmatprep.mubr.bf16.mxu1 %v1927_v48 }
 0x153   :  { %934 = vmatmul.mubr.bf16.gmra.mrb[24].mxu1 %v1929_v49 }
 0x154   :  { %941 = vmatprep.mubr.bf16.mxu1 %v1930_v52 }
 0x15b   :  { %942 = vmatmul.mubr.bf16.gmra.mrb[28].mxu1 %v1932_v53 }
 0x15c   :  { %949 = vmatprep.mubr.bf16.mxu1 %v1933_v56 }
 0x163   :  { %950 = vmatmul.mubr.bf16.gmra.mrb[32].mxu1 %v1935_v57 }
 0x164   :  { %957 = vmatprep.mubr.bf16.mxu1 %v1936_v60 }
 0x16b   :  { %958 = vmatmul.mubr.bf16.gmra.mrb[36].mxu1 %v1938_v61 }
 0x16c   :  { %965 = vmatprep.mubr.bf16.mxu1 %v1939_v62 }
 0x173   :  { %966 = vmatmul.mubr.bf16.gmra.mrb[40].mxu1 %v1941_v63 }
 0x1f6   :  { %v1720_v43 = vpop.f32.mrb[32].mxu0  ;;  %v1750_v10 = vpop.f32.mrb[0].mxu1 }
 0x1f7   :  { %v1721_v1 = vpop.f32.mrb[33].mxu0  ;;  %v1751_v46 = vpop.f32.mrb[1].mxu1 }
 0x1f8   :  { %v1722_v12 = vadd.f32 %v1721_v1, %v1720_v43  ;;  %v1752_v47 = vadd.f32 %v1751_v46, %v1750_v10  ;;  %v1723_v15 = vpop.f32.mrb[34].mxu0  ;;  %v1753_v50 = vpop.f32.mrb[2].mxu1 }
 0x1f9   :  { %v1724_v7 = vpop.f32.mrb[35].mxu0  ;;  %v1754_v51 = vpop.f32.mrb[3].mxu1 }
 0x1fa   :  { %v1166_v14 = vmul.f32 %v1722_v12, %v1009_v0  ;;  %v1176_v54 = vmul.f32 %v1752_v47, %v1059_v9  ;;  %v1725_v55 = vadd.f32 %v1724_v7, %v1723_v15  ;;  %v1755_v17 = vadd.f32 %v1754_v51, %v1753_v50  ;;  %v1084_v10 = vpop.permute.xlu1 %1083 }
 0x1fc   :  { %v1167_v19 = vmul.f32 %v1725_v55, %v1014_v2  ;;  %v2641_v58 = vadd.f32 %v2638_v16, %v1176_v54  ;;  %v2644_v59 = vadd.f32 %v2638_v16, %v1166_v14  ;;  %v1177_v21 = vmul.f32 %v1755_v17, %v1064_v18 }
 0x1fe   :  { %v1756_v22 = vpop.f32.mrb[4].mxu1  ;;  %1257 = vmax.xlane.f32.xlu1 %v2641_v58  ;;  %v1726_v11 = vpop.f32.mrb[36].mxu0  ;;  %1237 = vmax.xlane.f32.xlu0 %v2644_v59  ;;  %v2649_v28 = vadd.f32 %v2638_v16, %v1167_v19  ;;  %v2652_v31 = vadd.f32 %v2638_v16, %v1177_v21 }
 0x1ff   :  { %v1727_v13 = vpop.f32.mrb[37].mxu0  ;;  %v1757_v23 = vpop.f32.mrb[5].mxu1 }
 0x200   :  { %v1728_v24 = vadd.f32 %v1727_v13, %v1726_v11  ;;  %v1758_v25 = vadd.f32 %v1757_v23, %v1756_v22  ;;  %v1729_v26 = vpop.f32.mrb[38].mxu0  ;;  %v1759_v27 = vpop.f32.mrb[6].mxu1 }
 0x201   :  { %v1730_v29 = vpop.f32.mrb[39].mxu0  ;;  %v1760_v30 = vpop.f32.mrb[7].mxu1 }
 0x202   :  { %v1168_v32 = vmul.f32 %v1728_v24, %v1019_v3  ;;  %v1178_v33 = vmul.f32 %v1758_v25, %v1069_v20  ;;  %v1731_v34 = vadd.f32 %v1730_v29, %v1729_v26  ;;  %v1761_v35 = vadd.f32 %v1760_v30, %v1759_v27  ;;  %1239 = vmax.xlane.f32.xlu1 %v2649_v28  ;;  %v1094_v23 = vpop.permute.xlu1 %1093 }
 0x203   :  { %1259 = vmax.xlane.f32.xlu0 %v2652_v31 }
 0x204   :  { %v2657_v36 = vadd.f32 %v2638_v16, %v1178_v33  ;;  %v2660_v38 = vadd.f32 %v2638_v16, %v1168_v32  ;;  %v1169_v40 = vmul.f32 %v1731_v34, %v1024_v4  ;;  %v1179_v60 = vmul.f32 %v1761_v35, %v1074_v39  ;;  %v1079_v4 = vpop.permute.xlu0 %1078 }
 0x206   :  { %v1732_v44 = vpop.f32.mrb[40].mxu0  ;;  %v1762_v45 = vpop.f32.mrb[8].mxu1  ;;  %1261 = vmax.xlane.f32.xlu1 %v2657_v36  ;;  %v2665_v63 = vadd.f32 %v2638_v16, %v1169_v40  ;;  %v2674_v46 = vadd.f32 %v2638_v16, %v1179_v60 }
 0x207   :  { %1241 = vmax.xlane.f32.xlu0 %v2660_v38  ;;  %v1733_v48 = vpop.f32.mrb[41].mxu0  ;;  %v1763_v49 = vpop.f32.mrb[9].mxu1 }
 0x208   :  { %v1734_v52 = vadd.f32 %v1733_v48, %v1732_v44  ;;  %v1764_v53 = vadd.f32 %v1763_v49, %v1762_v45  ;;  %v1735_v56 = vpop.f32.mrb[42].mxu0  ;;  %v1765_v57 = vpop.f32.mrb[10].mxu1 }
 0x209   :  { %v1736_v61 = vpop.f32.mrb[43].mxu0  ;;  %v1766_v62 = vpop.f32.mrb[11].mxu1 }
 0x20a   :  { %v1170_v0 = vmul.f32 %v1734_v52, %v2623_v5  ;;  %v1737_v2 = vadd.f32 %v1736_v61, %v1735_v56  ;;  %v1767_v3 = vadd.f32 %v1766_v62, %v1765_v57  ;;  %v1180_v9 = vmul.f32 %v1764_v53, %v1079_v4  ;;  %v1089_v22 = vpop.permute.xlu0 %1088  ;;  %v1104_v61 = vpop.permute.xlu1 %1103 }
 0x20b   :  { %1243 = vmax.xlane.f32.xlu0 %v2665_v63 }
 0x20c   :  { %v2670_v43 = vadd.f32 %v2638_v16, %v1170_v0  ;;  %v1171_v1 = vmul.f32 %v1737_v2, %v2625_v6  ;;  %v2679_v54 = vadd.f32 %v2638_v16, %v1180_v9  ;;  %v1181_v55 = vmul.f32 %v1767_v3, %v1084_v10 }
 0x20e   :  { %v1738_v12 = vpop.f32.mrb[44].mxu0  ;;  %v1768_v47 = vpop.f32.mrb[12].mxu1  ;;  %1245 = vmax.xlane.f32.xlu1 %v2670_v43  ;;  %v2682_v18 = vadd.f32 %v2638_v16, %v1171_v1  ;;  %v2692_v25 = vadd.f32 %v2638_v16, %v1181_v55 }
 0x20f   :  { %1263 = vmax.xlane.f32.xlu0 %v2674_v46  ;;  %v1739_v5 = vpop.f32.mrb[45].mxu0  ;;  %v1769_v15 = vpop.f32.mrb[13].mxu1 }
 0x210   :  { %v1740_v50 = vadd.f32 %v1739_v5, %v1738_v12  ;;  %v1770_v7 = vadd.f32 %v1769_v15, %v1768_v47  ;;  %v1741_v51 = vpop.f32.mrb[46].mxu0  ;;  %v1771_v14 = vpop.f32.mrb[14].mxu1 }
 0x211   :  { %v1742_v6 = vpop.f32.mrb[47].mxu0  ;;  %v1772_v17 = vpop.f32.mrb[15].mxu1 }
 0x212   :  { %v1172_v19 = vmul.f32 %v1740_v50, %v2627_v8  ;;  %v1743_v20 = vadd.f32 %v1742_v6, %v1741_v51  ;;  %v1773_v21 = vadd.f32 %v1772_v17, %v1771_v14  ;;  %1265 = vmax.xlane.f32.xlu1 %v2679_v54  ;;  %v1182_v11 = vmul.f32 %v1770_v7, %v1089_v22  ;;  %v1099_v52 = vpop.permute.xlu0 %1098  ;;  %v1114_v47 = vpop.permute.xlu1 %1113 }
 0x213   :  { %1247 = vmax.xlane.f32.xlu0 %v2682_v18 }
 0x214   :  { %v2688_v13 = vadd.f32 %v2638_v16, %v1172_v19  ;;  %v1173_v24 = vmul.f32 %v1743_v20, %v2629_v41  ;;  %v2697_v35 = vadd.f32 %v2638_v16, %v1182_v11  ;;  %v1183_v39 = vmul.f32 %v1773_v21, %v1094_v23 }
 0x216   :  { %v1744_v26 = vpop.f32.mrb[48].mxu0  ;;  %v1774_v27 = vpop.f32.mrb[16].mxu1  ;;  %1249 = vmax.xlane.f32.xlu1 %v2688_v13  ;;  %v2700_v44 = vadd.f32 %v2638_v16, %v1173_v24  ;;  %v2710_v60 = vadd.f32 %v2638_v16, %v1183_v39 }
 0x217   :  { %1267 = vmax.xlane.f32.xlu0 %v2692_v25  ;;  %v1745_v8 = vpop.f32.mrb[49].mxu0  ;;  %v1775_v29 = vpop.f32.mrb[17].mxu1 }
 0x218   :  { %v1746_v30 = vadd.f32 %v1745_v8, %v1744_v26  ;;  %v1776_v32 = vadd.f32 %v1775_v29, %v1774_v27  ;;  %v1747_v33 = vpop.f32.mrb[50].mxu0  ;;  %v1777_v34 = vpop.f32.mrb[18].mxu1 }
 0x219   :  { %v1748_v41 = vpop.f32.mrb[51].mxu0  ;;  %v1778_v40 = vpop.f32.mrb[19].mxu1 }
 0x21a   :  { %v1174_v45 = vmul.f32 %v1746_v30, %v2631_v37  ;;  %v1749_v48 = vadd.f32 %v1748_v41, %v1747_v33  ;;  %v1779_v49 = vadd.f32 %v1778_v40, %v1777_v34  ;;  %1269 = vmax.xlane.f32.xlu1 %v2697_v35  ;;  %v1184_v53 = vmul.f32 %v1776_v32, %v1099_v52  ;;  %v1109_v4 = vpop.permute.xlu0 %1108  ;;  %v1124_v22 = vpop.permute.xlu1 %1123 }
 0x21b   :  { %1251 = vmax.xlane.f32.xlu0 %v2700_v44 }
 0x21c   :  { %v2706_v56 = vadd.f32 %v2638_v16, %v1174_v45  ;;  %v1175_v57 = vmul.f32 %v1749_v48, %v2633_v42  ;;  %v2715_v3 = vadd.f32 %v2638_v16, %v1184_v53  ;;  %v1185_v9 = vmul.f32 %v1779_v49, %v1104_v61 }
 0x21e   :  { %v1780_v62 = vpop.f32.mrb[20].mxu1  ;;  %1253 = vmax.xlane.f32.xlu1 %v2706_v56  ;;  %v2718_v42 = vadd.f32 %v2638_v16, %v1175_v57  ;;  %v2726_v50 = vadd.f32 %v2638_v16, %v1185_v9  ;;  %v1119_v6 = vpop.permute.xlu0 %1118 }
 0x21f   :  { %1271 = vmax.xlane.f32.xlu0 %v2710_v60  ;;  %v1781_v37 = vpop.f32.mrb[21].mxu1  ;;  %v1134_v39 = vpop.permute.xlu1 %1133 }
 0x220   :  { %v1782_v0 = vadd.f32 %v1781_v37, %v1780_v62  ;;  %v1783_v2 = vpop.f32.mrb[22].mxu1 }
 0x221   :  { %v1784_v10 = vpop.f32.mrb[23].mxu1 }
 0x222   :  { %v1186_v1 = vmul.f32 %v1782_v0, %v1109_v4  ;;  %v1785_v12 = vadd.f32 %v1784_v10, %v1783_v2  ;;  %1273 = vmax.xlane.f32.xlu1 %v2715_v3  ;;  %v1129_v30 = vpop.permute.xlu0 %1128 }
 0x223   :  { %1255 = vmax.xlane.f32.xlu0 %v2718_v42  ;;  %v1144_v0 = vpop.permute.xlu1 %1143 }
 0x224   :  { %v2723_v5 = vadd.f32 %v2638_v16, %v1186_v1  ;;  %v1187_v15 = vmul.f32 %v1785_v12, %v1114_v47 }
 0x226   :  { %v1786_v7 = vpop.f32.mrb[24].mxu1  ;;  %1277 = vmax.xlane.f32.xlu1 %v2723_v5  ;;  %v2731_v19 = vadd.f32 %v2638_v16, %v1187_v15  ;;  %v1139_v57 = vpop.permute.xlu0 %1138 }
 0x227   :  { %1275 = vmax.xlane.f32.xlu0 %v2726_v50  ;;  %v1787_v51 = vpop.f32.mrb[25].mxu1 }
 0x228   :  { %v1788_v14 = vadd.f32 %v1787_v51, %v1786_v7  ;;  %v1789_v55 = vpop.f32.mrb[26].mxu1 }
 0x229   :  { %v1790_v17 = vpop.f32.mrb[27].mxu1 }
 0x22a   :  { %v1188_v20 = vmul.f32 %v1788_v14, %v1119_v6  ;;  %v1791_v21 = vadd.f32 %v1790_v17, %v1789_v55  ;;  %v1149_v15 = vpop.permute.xlu0 %1148  ;;  %v1154_v55 = vpop.permute.xlu1 %1153 }
 0x22b   :  { %1279 = vmax.xlane.f32.xlu0 %v2731_v19 }
 0x22c   :  { %v1189_v11 = vmul.f32 %v1791_v21, %v1124_v22  ;;  %v2735_v23 = vadd.f32 %v2638_v16, %v1188_v20 }
 0x22e   :  { %v1792_v24 = vpop.f32.mrb[28].mxu1  ;;  %1281 = vmax.xlane.f32.xlu1 %v2735_v23  ;;  %v2739_v26 = vadd.f32 %v2638_v16, %v1189_v11 }
 0x22f   :  { %v1793_v27 = vpop.f32.mrb[29].mxu1 }
 0x230   :  { %v1794_v8 = vadd.f32 %v1793_v27, %v1792_v24  ;;  %v1795_v29 = vpop.f32.mrb[30].mxu1  ;;  %1283 = vmax.xlane.f32.xlu0 %v2739_v26  ;;  %v1159_v27 = vpop.permute.xlu0 %1158 }
 0x231   :  { %v1796_v32 = vpop.f32.mrb[31].mxu1 }
 0x232   :  { %v1190_v33 = vmul.f32 %v1794_v8, %v1129_v30  ;;  %v1797_v34 = vadd.f32 %v1796_v32, %v1795_v29  ;;  %v1164_v32 = vpop.permute.xlu1 %1163 }
 0x234   :  { %v1191_v41 = vmul.f32 %v1797_v34, %v1134_v39  ;;  %v2743_v40 = vadd.f32 %v2638_v16, %v1190_v33 }
 0x236   :  { %v1798_v45 = vpop.f32.mrb[32].mxu1  ;;  %1285 = vmax.xlane.f32.xlu1 %v2743_v40  ;;  %v2747_v48 = vadd.f32 %v2638_v16, %v1191_v41 }
 0x237   :  { %v1799_v49 = vpop.f32.mrb[33].mxu1 }
 0x238   :  { %v1800_v52 = vadd.f32 %v1799_v49, %v1798_v45  ;;  %v1801_v53 = vpop.f32.mrb[34].mxu1  ;;  %1287 = vmax.xlane.f32.xlu0 %v2747_v48 }
 0x239   :  { %v1802_v61 = vpop.f32.mrb[35].mxu1 }
 0x23a   :  { %v1192_v62 = vmul.f32 %v1800_v52, %v1139_v57  ;;  %v1803_v37 = vadd.f32 %v1802_v61, %v1801_v53 }
 0x23c   :  { %v1193_v2 = vmul.f32 %v1803_v37, %v1144_v0  ;;  %v2751_v4 = vadd.f32 %v2638_v16, %v1192_v62 }
 0x23e   :  { %v1804_v9 = vpop.f32.mrb[36].mxu1  ;;  %1289 = vmax.xlane.f32.xlu1 %v2751_v4  ;;  %v2755_v10 = vadd.f32 %v2638_v16, %v1193_v2 }
 0x23f   :  { %v1805_v1 = vpop.f32.mrb[37].mxu1 }
 0x240   :  { %v1806_v12 = vadd.f32 %v1805_v1, %v1804_v9  ;;  %v1807_v47 = vpop.f32.mrb[38].mxu1  ;;  %1291 = vmax.xlane.f32.xlu0 %v2755_v10 }
 0x241   :  { %v1808_v7 = vpop.f32.mrb[39].mxu1 }
 0x242   :  { %v1194_v51 = vmul.f32 %v1806_v12, %v1149_v15  ;;  %v1809_v14 = vadd.f32 %v1808_v7, %v1807_v47 }
 0x244   :  { %v1195_v6 = vmul.f32 %v1809_v14, %v1154_v55  ;;  %v2759_v17 = vadd.f32 %v2638_v16, %v1194_v51 }
 0x246   :  { %v1810_v20 = vpop.f32.mrb[40].mxu1  ;;  %1293 = vmax.xlane.f32.xlu1 %v2759_v17  ;;  %v2763_v21 = vadd.f32 %v2638_v16, %v1195_v6 }
 0x247   :  { %v1811_v22 = vpop.f32.mrb[41].mxu1 }
 0x248   :  { %v1812_v11 = vadd.f32 %v1811_v22, %v1810_v20  ;;  %v1813_v24 = vpop.f32.mrb[42].mxu1  ;;  %1295 = vmax.xlane.f32.xlu0 %v2763_v21 }
 0x249   :  { %v1814_v8 = vpop.f32.mrb[43].mxu1 }
 0x24a   :  { %v1196_v29 = vmul.f32 %v1812_v11, %v1159_v27  ;;  %v1815_v30 = vadd.f32 %v1814_v8, %v1813_v24 }
 0x24c   :  { %v1197_v33 = vmul.f32 %v1815_v30, %v1164_v32  ;;  %v2767_v34 = vadd.f32 %v2638_v16, %v1196_v29 }
 0x24e   :  { %1297 = vmax.xlane.f32.xlu1 %v2767_v34  ;;  %v2771_v39 = vadd.f32 %v2638_v16, %v1197_v33 }
 0x250   :  { %1299 = vmax.xlane.f32.xlu0 %v2771_v39 }
 0x28b   :  { %v1258_v41 = vpop.xlane.xlu1 %1257  ;;  %v1238_v45 = vpop.xlane.xlu0 %1237 }
 0x28c   :  { %v2775_v49 = vsub.f32 %v2644_v59, %v1238_v45  ;;  %v2778_v52 = vsub.f32 %v2641_v58, %v1258_v41 }
 0x28e   :  { %v1333_v53 = vmul.f32 1.442695, %v2775_v49  ;;  %v1353_v16 = vmul.f32 1.442695, %v2778_v52 }
 0x28f   :  { %v1240_v57 = vpop.xlane.xlu1 %1239 }
 0x290   :  { %v2782_v61 = vsub.f32 %v2649_v28, %v1240_v57  ;;  %v1260_v62 = vpop.xlane.xlu0 %1259  ;;  %1942 = vpow2.f32 %v1333_v53 }
 0x291   :  { %v2786_v37 = vsub.f32 %v2652_v31, %v1260_v62 }
 0x292   :  { %v1335_v0 = vmul.f32 1.442695, %v2782_v61 }
 0x293   :  { %v1262_v59 = vpop.xlane.xlu1 %1261  ;;  %v1355_v58 = vmul.f32 1.442695, %v2786_v37 }
 0x294   :  { %1944 = vpow2.f32 %v1335_v0  ;;  %v2791_v2 = vsub.f32 %v2657_v36, %v1262_v59  ;;  %v1242_v9 = vpop.xlane.xlu0 %1241 }
 0x295   :  { %1946 = vpow2.f32 %v1353_v16  ;;  %v2794_v28 = vsub.f32 %v2660_v38, %v1242_v9 }
 0x296   :  { %1948 = vpow2.f32 %v1355_v58  ;;  %v1357_v31 = vmul.f32 1.442695, %v2791_v2 }
 0x297   :  { %v1337_v1 = vmul.f32 1.442695, %v2794_v28 }
 0x298   :  { %v1244_v12 = vpop.xlane.xlu0 %1243 }
 0x299   :  { %1950 = vpow2.f32 %v1337_v1  ;;  %v2799_v47 = vsub.f32 %v2665_v63, %v1244_v12 }
 0x29a   :  { %v1943_v15 = vpop.eup %1942  ;;  %1952 = vpow2.f32 %v1357_v31 }
 0x29b   :  { %v1339_v7 = vmul.f32 1.442695, %v2799_v47  ;;  %v1246_v36 = vpop.xlane.xlu1 %1245  ;;  %1397 = vadd.xlane.f32.xlu1 %v1943_v15 }
 0x29c   :  { %v2803_v51 = vsub.f32 %v2670_v43, %v1246_v36  ;;  %v1264_v38 = vpop.xlane.xlu0 %1263 }
 0x29d   :  { %1954 = vpow2.f32 %v1339_v7  ;;  %v2806_v14 = vsub.f32 %v2674_v46, %v1264_v38 }
 0x29e   :  { %v1945_v55 = vpop.eup %1944  ;;  %v1341_v6 = vmul.f32 1.442695, %v2803_v51 }
 0x29f   :  { %v1947_v20 = vpop.eup %1946  ;;  %v1359_v63 = vmul.f32 1.442695, %v2806_v14  ;;  %v1266_v22 = vpop.xlane.xlu1 %1265  ;;  %1399 = vadd.xlane.f32.xlu0 %v1945_v55 }
 0x2a0   :  { %1956 = vpow2.f32 %v1341_v6  ;;  %v2811_v11 = vsub.f32 %v2679_v54, %v1266_v22  ;;  %1417 = vadd.xlane.f32.xlu1 %v1947_v20  ;;  %v1248_v43 = vpop.xlane.xlu0 %1247  ;;  %v1949_v46 = vpop.eup %1948 }
 0x2a1   :  { %1958 = vpow2.f32 %v1359_v63  ;;  %v2814_v24 = vsub.f32 %v2682_v18, %v1248_v43 }
 0x2a2   :  { %v1361_v27 = vmul.f32 1.442695, %v2811_v11 }
 0x2a3   :  { %v1951_v8 = vpop.eup %1950  ;;  %v1343_v29 = vmul.f32 1.442695, %v2814_v24  ;;  %v1250_v30 = vpop.xlane.xlu1 %1249  ;;  %1419 = vadd.xlane.f32.xlu0 %v1949_v46 }
 0x2a4   :  { %1960 = vpow2.f32 %v1361_v27  ;;  %v2819_v32 = vsub.f32 %v2688_v13, %v1250_v30  ;;  %1401 = vadd.xlane.f32.xlu1 %v1951_v8  ;;  %v1268_v54 = vpop.xlane.xlu0 %1267  ;;  %v1953_v18 = vpop.eup %1952 }
 0x2a5   :  { %1962 = vpow2.f32 %v1343_v29  ;;  %v2822_v33 = vsub.f32 %v2692_v25, %v1268_v54 }
 0x2a6   :  { %v1345_v41 = vmul.f32 1.442695, %v2819_v32 }
 0x2a7   :  { %v1955_v45 = vpop.eup %1954  ;;  %v1363_v53 = vmul.f32 1.442695, %v2822_v33  ;;  %v1270_v57 = vpop.xlane.xlu1 %1269 }
 0x2a8   :  { %1964 = vpow2.f32 %v1345_v41  ;;  %v2827_v62 = vsub.f32 %v2697_v35, %v1270_v57  ;;  %1421 = vadd.xlane.f32.xlu1 %v1953_v18  ;;  %1403 = vadd.xlane.f32.xlu0 %v1955_v45  ;;  %v1252_v13 = vpop.xlane.xlu0 %1251 }
 0x2a9   :  { %1966 = vpow2.f32 %v1363_v53  ;;  %v2830_v16 = vsub.f32 %v2700_v44, %v1252_v13 }
 0x2aa   :  { %v1957_v25 = vpop.eup %1956  ;;  %v1365_v0 = vmul.f32 1.442695, %v2827_v62 }
 0x2ab   :  { %v1959_v59 = vpop.eup %1958  ;;  %v1347_v58 = vmul.f32 1.442695, %v2830_v16  ;;  %v1254_v9 = vpop.xlane.xlu1 %1253 }
 0x2ac   :  { %1968 = vpow2.f32 %v1365_v0  ;;  %v2835_v1 = vsub.f32 %v2706_v56, %v1254_v9  ;;  %1405 = vadd.xlane.f32.xlu1 %v1957_v25  ;;  %1423 = vadd.xlane.f32.xlu0 %v1959_v59  ;;  %v1272_v35 = vpop.xlane.xlu0 %1271 }
 0x2ad   :  { %1970 = vpow2.f32 %v1347_v58  ;;  %v2838_v31 = vsub.f32 %v2710_v60, %v1272_v35 }
 0x2ae   :  { %v1961_v44 = vpop.eup %1960  ;;  %v1349_v12 = vmul.f32 1.442695, %v2835_v1 }
 0x2af   :  { %v1963_v15 = vpop.eup %1962  ;;  %v1367_v7 = vmul.f32 1.442695, %v2838_v31  ;;  %v1274_v36 = vpop.xlane.xlu1 %1273 }
 0x2b0   :  { %1972 = vpow2.f32 %v1349_v12  ;;  %v2843_v38 = vsub.f32 %v2715_v3, %v1274_v36  ;;  %1425 = vadd.xlane.f32.xlu1 %v1961_v44  ;;  %1407 = vadd.xlane.f32.xlu0 %v1963_v15  ;;  %v1256_v56 = vpop.xlane.xlu0 %1255 }
 0x2b1   :  { %1974 = vpow2.f32 %v1367_v7  ;;  %v2846_v55 = vsub.f32 %v2718_v42, %v1256_v56 }
 0x2b2   :  { %v1965_v60 = vpop.eup %1964  ;;  %v1369_v6 = vmul.f32 1.442695, %v2843_v38 }
 0x2b3   :  { %v1967_v20 = vpop.eup %1966  ;;  %v1351_v63 = vmul.f32 1.442695, %v2846_v55  ;;  %v1278_v22 = vpop.xlane.xlu1 %1277 }
 0x2b4   :  { %1976 = vpow2.f32 %v1369_v6  ;;  %v2851_v43 = vsub.f32 %v2723_v5, %v1278_v22  ;;  %1409 = vadd.xlane.f32.xlu1 %v1965_v60  ;;  %1427 = vadd.xlane.f32.xlu0 %v1967_v20  ;;  %v1276_v3 = vpop.xlane.xlu0 %1275 }
 0x2b5   :  { %1978 = vpow2.f32 %v1351_v63  ;;  %v2854_v46 = vsub.f32 %v2726_v50, %v1276_v3 }
 0x2b6   :  { %v1969_v42 = vpop.eup %1968  ;;  %v1373_v27 = vmul.f32 1.442695, %v2851_v43 }
 0x2b7   :  { %v1971_v8 = vpop.eup %1970  ;;  %v1371_v29 = vmul.f32 1.442695, %v2854_v46 }
 0x2b8   :  { %1980 = vpow2.f32 %v1373_v27  ;;  %1429 = vadd.xlane.f32.xlu1 %v1969_v42  ;;  %1411 = vadd.xlane.f32.xlu0 %v1971_v8  ;;  %v1280_v30 = vpop.xlane.xlu0 %1279 }
 0x2b9   :  { %1982 = vpow2.f32 %v1371_v29  ;;  %v2859_v5 = vsub.f32 %v2731_v19, %v1280_v30 }
 0x2ba   :  { %v1973_v54 = vpop.eup %1972 }
 0x2bb   :  { %v1975_v18 = vpop.eup %1974  ;;  %v1375_v41 = vmul.f32 1.442695, %v2859_v5  ;;  %v1282_v50 = vpop.xlane.xlu1 %1281 }
 0x2bc   :  { %v2863_v45 = vsub.f32 %v2735_v23, %v1282_v50  ;;  %1413 = vadd.xlane.f32.xlu1 %v1973_v54  ;;  %1431 = vadd.xlane.f32.xlu0 %v1975_v18 }
 0x2bd   :  { %1984 = vpow2.f32 %v1375_v41  ;;  %v1284_v53 = vpop.xlane.xlu0 %1283 }
 0x2be   :  { %v1977_v57 = vpop.eup %1976  ;;  %v1377_v13 = vmul.f32 1.442695, %v2863_v45  ;;  %v2867_v25 = vsub.f32 %v2739_v26, %v1284_v53 }
 0x2bf   :  { %v1979_v19 = vpop.eup %1978 }
 0x2c0   :  { %1986 = vpow2.f32 %v1377_v13  ;;  %v1379_v0 = vmul.f32 1.442695, %v2867_v25  ;;  %1433 = vadd.xlane.f32.xlu1 %v1977_v57  ;;  %1415 = vadd.xlane.f32.xlu0 %v1979_v19 }
 0x2c2   :  { %v1981_v59 = vpop.eup %1980  ;;  %1988 = vpow2.f32 %v1379_v0 }
 0x2c3   :  { %v1983_v23 = vpop.eup %1982  ;;  %v1286_v58 = vpop.xlane.xlu1 %1285 }
 0x2c4   :  { %v2871_v9 = vsub.f32 %v2743_v40, %v1286_v58  ;;  %1437 = vadd.xlane.f32.xlu1 %v1981_v59  ;;  %1435 = vadd.xlane.f32.xlu0 %v1983_v23 }
 0x2c5   :  { %v1288_v35 = vpop.xlane.xlu0 %1287 }
 0x2c6   :  { %v1381_v44 = vmul.f32 1.442695, %v2871_v9  ;;  %v2875_v26 = vsub.f32 %v2747_v48, %v1288_v35 }
 0x2c7   :  { %v1985_v12 = vpop.eup %1984 }
 0x2c8   :  { %1990 = vpow2.f32 %v1381_v44  ;;  %v1383_v15 = vmul.f32 1.442695, %v2875_v26  ;;  %1439 = vadd.xlane.f32.xlu0 %v1985_v12 }
 0x2ca   :  { %v1987_v7 = vpop.eup %1986  ;;  %1992 = vpow2.f32 %v1383_v15 }
 0x2cb   :  { %v1290_v36 = vpop.xlane.xlu1 %1289  ;;  %1441 = vadd.xlane.f32.xlu1 %v1987_v7 }
 0x2cc   :  { %v1989_v56 = vpop.eup %1988  ;;  %v2879_v40 = vsub.f32 %v2751_v4, %v1290_v36 }
 0x2cd   :  { %1443 = vadd.xlane.f32.xlu0 %v1989_v56  ;;  %v1292_v60 = vpop.xlane.xlu0 %1291 }
 0x2ce   :  { %v1385_v6 = vmul.f32 1.442695, %v2879_v40  ;;  %v2883_v48 = vsub.f32 %v2755_v10, %v1292_v60 }
 0x2d0   :  { %1994 = vpow2.f32 %v1385_v6  ;;  %v1387_v20 = vmul.f32 1.442695, %v2883_v48 }
 0x2d2   :  { %v1991_v63 = vpop.eup %1990  ;;  %1996 = vpow2.f32 %v1387_v20 }
 0x2d3   :  { %v1294_v22 = vpop.xlane.xlu1 %1293  ;;  %1445 = vadd.xlane.f32.xlu1 %v1991_v63 }
 0x2d4   :  { %v1993_v3 = vpop.eup %1992  ;;  %v2887_v42 = vsub.f32 %v2759_v17, %v1294_v22 }
 0x2d5   :  { %1447 = vadd.xlane.f32.xlu0 %v1993_v3  ;;  %v1296_v4 = vpop.xlane.xlu0 %1295 }
 0x2d6   :  { %v1389_v27 = vmul.f32 1.442695, %v2887_v42  ;;  %v2891_v8 = vsub.f32 %v2763_v21, %v1296_v4 }
 0x2d8   :  { %1998 = vpow2.f32 %v1389_v27  ;;  %v1391_v10 = vmul.f32 1.442695, %v2891_v8 }
 0x2da   :  { %v1995_v29 = vpop.eup %1994  ;;  %2000 = vpow2.f32 %v1391_v10 }
 0x2db   :  { %v1298_v30 = vpop.xlane.xlu1 %1297  ;;  %1449 = vadd.xlane.f32.xlu1 %v1995_v29 }
 0x2dc   :  { %v1997_v54 = vpop.eup %1996  ;;  %v2895_v18 = vsub.f32 %v2767_v34, %v1298_v30 }
 0x2dd   :  { %1451 = vadd.xlane.f32.xlu0 %v1997_v54  ;;  %v1300_v17 = vpop.xlane.xlu0 %1299 }
 0x2de   :  { %v1393_v41 = vmul.f32 1.442695, %v2895_v18  ;;  %v2899_v50 = vsub.f32 %v2771_v39, %v1300_v17 }
 0x2e0   :  { %2002 = vpow2.f32 %v1393_v41  ;;  %v1395_v21 = vmul.f32 1.442695, %v2899_v50 }
 0x2e2   :  { %v1999_v53 = vpop.eup %1998  ;;  %2004 = vpow2.f32 %v1395_v21 }
 0x2e3   :  { %1453 = vadd.xlane.f32.xlu1 %v1999_v53 }
 0x2e4   :  { %v2001_v57 = vpop.eup %2000 }
 0x2e5   :  { %1455 = vadd.xlane.f32.xlu0 %v2001_v57 }
 0x2ea   :  { %v2003_v13 = vpop.eup %2002 }
 0x2eb   :  { %1457 = vadd.xlane.f32.xlu1 %v2003_v13 }
 0x2ec   :  { %v2005_v19 = vpop.eup %2004 }
 0x2ed   :  { %1459 = vadd.xlane.f32.xlu0 %v2005_v19 }
 0x328   :  { %v1398_v34 = vpop.xlane.xlu1 %1397 }
 0x329   :  { %2006 = vlog2.f32 %v1398_v34 }
 0x32c   :  { %v1400_v0 = vpop.xlane.xlu0 %1399 }
 0x32d   :  { %v1418_v59 = vpop.xlane.xlu1 %1417  ;;  %2008 = vlog2.f32 %v1400_v0 }
 0x32e   :  { %2010 = vlog2.f32 %v1418_v59 }
 0x330   :  { %v1420_v39 = vpop.xlane.xlu0 %1419 }
 0x331   :  { %v1402_v23 = vpop.xlane.xlu1 %1401  ;;  %2012 = vlog2.f32 %v1420_v39 }
 0x332   :  { %2014 = vlog2.f32 %v1402_v23 }
 0x333   :  { %v2007_v58 = vpop.eup %2006 }
 0x334   :  { %v1462_v35 = vmul.f32 0.6931472, %v2007_v58 }
 0x335   :  { %v1422_v44 = vpop.xlane.xlu1 %1421  ;;  %v1404_v12 = vpop.xlane.xlu0 %1403 }
 0x336   :  { %2016 = vlog2.f32 %v1422_v44  ;;  %v1525_v7 = vsub.f32 %v2775_v49, %v1462_v35 }
 0x337   :  { %v2009_v15 = vpop.eup %2008  ;;  %2018 = vlog2.f32 %v1404_v12 }
 0x338   :  { %v2011_v36 = vpop.eup %2010  ;;  %v1464_v56 = vmul.f32 0.6931472, %v2009_v15  ;;  %1557 = vst [vmem:[#allocation2] sm:$0xff] %v1525_v7 }
 0x339   :  { %v1482_v60 = vmul.f32 0.6931472, %v2011_v36  ;;  %v1406_v6 = vpop.xlane.xlu1 %1405  ;;  %v1424_v20 = vpop.xlane.xlu0 %1423 }
 0x33a   :  { %v1526_v63 = vsub.f32 %v2782_v61, %v1464_v56  ;;  %2020 = vlog2.f32 %v1406_v6 }
 0x33b   :  { %v2013_v22 = vpop.eup %2012  ;;  %v1535_v3 = vsub.f32 %v2778_v52, %v1482_v60  ;;  %2022 = vlog2.f32 %v1424_v20 }
 0x33c   :  { %v2015_v4 = vpop.eup %2014  ;;  %1558 = vst [vmem:[#allocation2 + $0x8] sm:$0xff] %v1526_v63  ;;  %v1484_v27 = vmul.f32 0.6931472, %v2013_v22 }
 0x33d   :  { %1567 = vst [vmem:[#allocation2 + $0x50] sm:$0xff] %v1535_v3  ;;  %v1466_v10 = vmul.f32 0.6931472, %v2015_v4  ;;  %v1426_v49 = vpop.xlane.xlu1 %1425  ;;  %v1408_v29 = vpop.xlane.xlu0 %1407 }
 0x33e   :  { %v1536_v30 = vsub.f32 %v2786_v37, %v1484_v27  ;;  %2024 = vlog2.f32 %v1426_v49 }
 0x33f   :  { %v1527_v54 = vsub.f32 %v2794_v28, %v1466_v10  ;;  %2026 = vlog2.f32 %v1408_v29 }
 0x340   :  { %v2017_v17 = vpop.eup %2016  ;;  %1568 = vst [vmem:[#allocation2 + $0x58] sm:$0xff] %v1536_v30 }
 0x341   :  { %v2019_v61 = vpop.eup %2018  ;;  %1559 = vst [vmem:[#allocation2 + $0x10] sm:$0xff] %v1527_v54  ;;  %v1486_v41 = vmul.f32 0.6931472, %v2017_v17  ;;  %v1410_v52 = vpop.xlane.xlu1 %1409 }
 0x342   :  { %v1428_v21 = vpop.xlane.xlu0 %1427  ;;  %v1468_v53 = vmul.f32 0.6931472, %v2019_v61  ;;  %2028 = vlog2.f32 %v1410_v52 }
 0x343   :  { %v1537_v57 = vsub.f32 %v2791_v2, %v1486_v41  ;;  %2030 = vlog2.f32 %v1428_v21 }
 0x344   :  { %v2021_v13 = vpop.eup %2020  ;;  %v1528_v19 = vsub.f32 %v2799_v47, %v1468_v53 }
 0x345   :  { %v2023_v37 = vpop.eup %2022  ;;  %1569 = vst [vmem:[#allocation2 + $0x60] sm:$0xff] %v1537_v57  ;;  %v1470_v34 = vmul.f32 0.6931472, %v2021_v13  ;;  %v1430_v28 = vpop.xlane.xlu1 %1429 }
 0x346   :  { %v1412_v0 = vpop.xlane.xlu0 %1411  ;;  %1560 = vst [vmem:[#allocation2 + $0x18] sm:$0xff] %v1528_v19  ;;  %v1488_v59 = vmul.f32 0.6931472, %v2023_v37  ;;  %2032 = vlog2.f32 %v1430_v28 }
 0x347   :  { %v1529_v39 = vsub.f32 %v2803_v51, %v1470_v34  ;;  %2034 = vlog2.f32 %v1412_v0 }
 0x348   :  { %v2025_v23 = vpop.eup %2024  ;;  %v1538_v58 = vsub.f32 %v2806_v14, %v1488_v59 }
 0x349   :  { %v2027_v35 = vpop.eup %2026  ;;  %1561 = vst [vmem:[#allocation2 + $0x20] sm:$0xff] %v1529_v39  ;;  %v1490_v2 = vmul.f32 0.6931472, %v2025_v23  ;;  %v1414_v44 = vpop.xlane.xlu1 %1413 }
 0x34a   :  { %v1432_v12 = vpop.xlane.xlu0 %1431  ;;  %1570 = vst [vmem:[#allocation2 + $0x68] sm:$0xff] %v1538_v58  ;;  %v1472_v47 = vmul.f32 0.6931472, %v2027_v35  ;;  %2036 = vlog2.f32 %v1414_v44 }
 0x34b   :  { %v1539_v15 = vsub.f32 %v2811_v11, %v1490_v2  ;;  %2038 = vlog2.f32 %v1432_v12 }
 0x34c   :  { %v2029_v7 = vpop.eup %2028  ;;  %v1530_v36 = vsub.f32 %v2814_v24, %v1472_v47 }
 0x34d   :  { %v2031_v56 = vpop.eup %2030  ;;  %1571 = vst [vmem:[#allocation2 + $0x70] sm:$0xff] %v1539_v15  ;;  %v1474_v51 = vmul.f32 0.6931472, %v2029_v7  ;;  %v1434_v60 = vpop.xlane.xlu1 %1433 }
 0x34e   :  { %v1416_v6 = vpop.xlane.xlu0 %1415  ;;  %1562 = vst [vmem:[#allocation2 + $0x28] sm:$0xff] %v1530_v36  ;;  %v1492_v14 = vmul.f32 0.6931472, %v2031_v56  ;;  %2040 = vlog2.f32 %v1434_v60 }
 0x34f   :  { %v1531_v20 = vsub.f32 %v2819_v32, %v1474_v51  ;;  %2042 = vlog2.f32 %v1416_v6 }
 0x350   :  { %v2033_v63 = vpop.eup %2032  ;;  %v1540_v22 = vsub.f32 %v2822_v33, %v1492_v14 }
 0x351   :  { %v2035_v3 = vpop.eup %2034  ;;  %1563 = vst [vmem:[#allocation2 + $0x30] sm:$0xff] %v1531_v20  ;;  %v1494_v11 = vmul.f32 0.6931472, %v2033_v63  ;;  %v1438_v4 = vpop.xlane.xlu1 %1437 }
 0x352   :  { %v1436_v27 = vpop.xlane.xlu0 %1435  ;;  %1572 = vst [vmem:[#allocation2 + $0x78] sm:$0xff] %v1540_v22  ;;  %v1476_v24 = vmul.f32 0.6931472, %v2035_v3  ;;  %2044 = vlog2.f32 %v1438_v4 }
 0x353   :  { %v1541_v10 = vsub.f32 %v2827_v62, %v1494_v11  ;;  %2046 = vlog2.f32 %v1436_v27 }
 0x354   :  { %v2037_v49 = vpop.eup %2036  ;;  %v1532_v29 = vsub.f32 %v2830_v16, %v1476_v24 }
 0x355   :  { %v2039_v30 = vpop.eup %2038  ;;  %1573 = vst [vmem:[#allocation2 + $0x80] sm:$0xff] %v1541_v10  ;;  %v1478_v32 = vmul.f32 0.6931472, %v2037_v49 }
 0x356   :  { %v1440_v54 = vpop.xlane.xlu0 %1439  ;;  %1564 = vst [vmem:[#allocation2 + $0x38] sm:$0xff] %v1532_v29  ;;  %v1496_v33 = vmul.f32 0.6931472, %v2039_v30 }
 0x357   :  { %2048 = vlog2.f32 %v1440_v54  ;;  %v1533_v17 = vsub.f32 %v2835_v1, %v1478_v32 }
 0x358   :  { %v2041_v61 = vpop.eup %2040  ;;  %v1542_v41 = vsub.f32 %v2838_v31, %v1496_v33  ;;  %v1442_v52 = vpop.xlane.xlu1 %1441 }
 0x359   :  { %v2043_v21 = vpop.eup %2042  ;;  %1565 = vst [vmem:[#allocation2 + $0x40] sm:$0xff] %v1533_v17  ;;  %v1498_v62 = vmul.f32 0.6931472, %v2041_v61  ;;  %2050 = vlog2.f32 %v1442_v52 }
 0x35a   :  { %1574 = vst [vmem:[#allocation2 + $0x88] sm:$0xff] %v1542_v41  ;;  %v1480_v53 = vmul.f32 0.6931472, %v2043_v21  ;;  %v1444_v16 = vpop.xlane.xlu0 %1443 }
 0x35b   :  { %v1543_v57 = vsub.f32 %v2843_v38, %v1498_v62  ;;  %2052 = vlog2.f32 %v1444_v16 }
 0x35c   :  { %v2045_v13 = vpop.eup %2044  ;;  %v1534_v19 = vsub.f32 %v2846_v55, %v1480_v53 }
 0x35d   :  { %v2047_v37 = vpop.eup %2046  ;;  %1575 = vst [vmem:[#allocation2 + $0x90] sm:$0xff] %v1543_v57  ;;  %v1502_v1 = vmul.f32 0.6931472, %v2045_v13 }
 0x35e   :  { %1566 = vst [vmem:[#allocation2 + $0x48] sm:$0xff] %v1534_v19  ;;  %v1500_v34 = vmul.f32 0.6931472, %v2047_v37 }
 0x35f   :  { %v1545_v31 = vsub.f32 %v2851_v43, %v1502_v1 }
 0x360   :  { %v1544_v0 = vsub.f32 %v2854_v46, %v1500_v34  ;;  %v1446_v59 = vpop.xlane.xlu1 %1445 }
 0x361   :  { %v2049_v28 = vpop.eup %2048  ;;  %1577 = vst [vmem:[#allocation2 + $0xa0] sm:$0xff] %v1545_v31  ;;  %2054 = vlog2.f32 %v1446_v59 }
 0x362   :  { %v1504_v39 = vmul.f32 0.6931472, %v2049_v28  ;;  %1576 = vst [vmem:[#allocation2 + $0x98] sm:$0xff] %v1544_v0  ;;  %v1448_v38 = vpop.xlane.xlu0 %1447 }
 0x363   :  { %v2051_v23 = vpop.eup %2050  ;;  %2056 = vlog2.f32 %v1448_v38 }
 0x364   :  { %v1546_v58 = vsub.f32 %v2859_v5, %v1504_v39  ;;  %v1506_v55 = vmul.f32 0.6931472, %v2051_v23 }
 0x365   :  { %v2053_v35 = vpop.eup %2052 }
 0x366   :  { %1578 = vst [vmem:[#allocation2 + $0xa8] sm:$0xff] %v1546_v58  ;;  %v1547_v2 = vsub.f32 %v2863_v45, %v1506_v55  ;;  %v1508_v44 = vmul.f32 0.6931472, %v2053_v35 }
 0x368   :  { %1579 = vst [vmem:[#allocation2 + $0xb0] sm:$0xff] %v1547_v2  ;;  %v1548_v43 = vsub.f32 %v2867_v25, %v1508_v44  ;;  %v1450_v46 = vpop.xlane.xlu1 %1449 }
 0x369   :  { %2058 = vlog2.f32 %v1450_v46 }
 0x36a   :  { %1580 = vst [vmem:[#allocation2 + $0xb8] sm:$0xff] %v1548_v43  ;;  %v1452_v12 = vpop.xlane.xlu0 %1451 }
 0x36b   :  { %v2055_v47 = vpop.eup %2054  ;;  %2060 = vlog2.f32 %v1452_v12 }
 0x36c   :  { %v1510_v15 = vmul.f32 0.6931472, %v2055_v47 }
 0x36d   :  { %v2057_v7 = vpop.eup %2056 }
 0x36e   :  { %v1549_v5 = vsub.f32 %v2871_v9, %v1510_v15  ;;  %v1512_v36 = vmul.f32 0.6931472, %v2057_v7 }
 0x370   :  { %1581 = vst [vmem:[#allocation2 + $0xc0] sm:$0xff] %v1549_v5  ;;  %v1550_v56 = vsub.f32 %v2875_v26, %v1512_v36  ;;  %v1454_v51 = vpop.xlane.xlu1 %1453 }
 0x371   :  { %2062 = vlog2.f32 %v1454_v51 }
 0x372   :  { %1582 = vst [vmem:[#allocation2 + $0xc8] sm:$0xff] %v1550_v56  ;;  %v1456_v45 = vpop.xlane.xlu0 %1455 }
 0x373   :  { %v2059_v60 = vpop.eup %2058  ;;  %2064 = vlog2.f32 %v1456_v45 }
 0x374   :  { %v1514_v25 = vmul.f32 0.6931472, %v2059_v60 }
 0x375   :  { %v2061_v6 = vpop.eup %2060 }
 0x376   :  { %v1551_v14 = vsub.f32 %v2879_v40, %v1514_v25  ;;  %v1516_v20 = vmul.f32 0.6931472, %v2061_v6 }
 0x378   :  { %1583 = vst [vmem:[#allocation2 + $0xd0] sm:$0xff] %v1551_v14  ;;  %v1552_v63 = vsub.f32 %v2883_v48, %v1516_v20  ;;  %v1458_v22 = vpop.xlane.xlu1 %1457 }
 0x379   :  { %2066 = vlog2.f32 %v1458_v22 }
 0x37a   :  { %1584 = vst [vmem:[#allocation2 + $0xd8] sm:$0xff] %v1552_v63  ;;  %v1460_v9 = vpop.xlane.xlu0 %1459 }
 0x37b   :  { %v2063_v3 = vpop.eup %2062  ;;  %2068 = vlog2.f32 %v1460_v9 }
 0x37c   :  { %v1518_v26 = vmul.f32 0.6931472, %v2063_v3 }
 0x37d   :  { %v2065_v11 = vpop.eup %2064 }
 0x37e   :  { %v1553_v4 = vsub.f32 %v2887_v42, %v1518_v26  ;;  %v1520_v27 = vmul.f32 0.6931472, %v2065_v11 }
 0x380   :  { %1585 = vst [vmem:[#allocation2 + $0xe0] sm:$0xff] %v1553_v4  ;;  %v1554_v24 = vsub.f32 %v2891_v8, %v1520_v27 }
 0x382   :  { %1586 = vst [vmem:[#allocation2 + $0xe8] sm:$0xff] %v1554_v24 }
 0x383   :  { %v2067_v40 = vpop.eup %2066 }
 0x384   :  { %v1522_v10 = vmul.f32 0.6931472, %v2067_v40 }
 0x385   :  { %v2069_v49 = vpop.eup %2068 }
 0x386   :  { %v1555_v48 = vsub.f32 %v2895_v18, %v1522_v10  ;;  %v1524_v29 = vmul.f32 0.6931472, %v2069_v49 }
 0x388   :  { %1587 = vst [vmem:[#allocation2 + $0xf0] sm:$0xff] %v1555_v48  ;;  %v1556_v30 = vsub.f32 %v2899_v50, %v1524_v29 }
 0x38a   :  { %1588 = vst [vmem:[#allocation2 + $0xf8] sm:$0xff] %v1556_v30 }
 0x38b   :  { %2081 = shalt.err (!%p2078_p4)
}
 0x38c   :  { %s2082_s23 = scalar_lea.hbm %s2952_s6, 4096 }
 0x38d   :  { %p2083_p5 = scmp.ne.s32.totalorder %s2952_s6, %s2082_s23  ;;  %p2086_p6 = scmp.lt.u32.totalorder %s2082_s23, %s2952_s6 }
 0x38f   :  { %p2088_p7 = pnand %p2086_p6, %p2083_p5 }
 0x391   :  { %2091 = shalt.err (!%p2088_p7)
}
 0x392   :  { %s2096_s28 = smov 128   ;;  %s2097_s4 = smov 8  }
 0x393   :  { %1600 = dma.vmem_to_hbm [thread:$0]  %s1595_s19, 4096, %s2952_s6, [#allocation3], %s2096_s28, %s2096_s28, %s2097_s4  }
 0x394   :  { %2092 = dma.done.wait [#allocation3], 4096  }
 0x395   :  { %2093 = vsyncadd [#allocation3], 4294963200 }
 0x396   :  { %1604 = vsyncpa [#allocation3], 1 }

</bundles_post_ra>
